<compile_context>
chip_gen: v6e
topology: v6e:2x2x1
jax: 0.10.0
libtpu: 0.0.40
codegen_flags: <defaults>
</compile_context>

<pallas_src>
import functools
import math

import jax
import jax.numpy as jnp
from jax.experimental import pallas as pl
from jax.experimental.pallas import tpu as pltpu

# Scoped-VMEM budget: above the 16/32 MiB defaults, within physical VMEM on
# v5e/v6e (128 MiB) and v7x (64 MiB per TensorCore).
_VMEM_LIMIT_BYTES = 64 * 1024 * 1024


def _cparams(*sem):
    return pltpu.CompilerParams(
        dimension_semantics=tuple(sem), vmem_limit_bytes=_VMEM_LIMIT_BYTES
    )


# ----------------------------------------------------------------------------
# helpers
# ----------------------------------------------------------------------------
def _pick_tile(dim, target, align):
    """Largest `align`-granular tile <= target that divides dim (or the full dim)."""
    if dim <= target:
        return dim
    t = (target // align) * align
    while t >= align:
        if dim % t == 0:
            return t
        t -= align
    return dim  # fall back: whole dim in a single block


# ----------------------------------------------------------------------------
# Linear kernels (bf16 weights/activations, f32 accumulation)
# ----------------------------------------------------------------------------
def _linear_kernel(x_ref, w_ref, b_ref, o_ref, acc_ref):
    """o = x @ w + b, tiled over (M, Out, In) with f32 accumulator."""
    @pl.when(pl.program_id(2) == 0)
    def _():
        acc_ref[...] = jnp.zeros_like(acc_ref)

    acc_ref[...] += jnp.dot(
        x_ref[...], w_ref[...], preferred_element_type=jnp.float32
    )

    @pl.when(pl.program_id(2) == pl.num_programs(2) - 1)
    def _():
        o_ref[...] = (acc_ref[...] + b_ref[...]).astype(o_ref.dtype)


def linear(x2d, w, b, *, out_dtype=jnp.bfloat16, tm=256, tn=256, tk=512):
    """x2d: (M, In) bf16; w: (In, Out) bf16 pre-transposed; b: (Out,) f32."""
    M, In = x2d.shape
    Out = w.shape[1]
    tm = _pick_tile(M, tm, 8)
    tn = _pick_tile(Out, tn, 128)
    tk = _pick_tile(In, tk, 128)
    grid = (M // tm, Out // tn, In // tk)
    return pl.pallas_call(
        _linear_kernel,
        out_shape=jax.ShapeDtypeStruct((M, Out), out_dtype),
        grid=grid,
        in_specs=[
            pl.BlockSpec((tm, tk), lambda i, j, k: (i, k)),
            pl.BlockSpec((tk, tn), lambda i, j, k: (k, j)),
            pl.BlockSpec((1, tn), lambda i, j, k: (0, j)),
        ],
        out_specs=pl.BlockSpec((tm, tn), lambda i, j, k: (i, j)),
        scratch_shapes=[pltpu.VMEM((tm, tn), jnp.float32)],
        compiler_params=_cparams("parallel", "parallel", "arbitrary"),
    )(x2d, w, b.reshape(1, Out))


def _linear_res_ln_kernel(x_ref, w_ref, b_ref, r_ref, g_ref, bb_ref, o_ref, acc_ref):
    """o = LayerNorm(x @ w + b + residual); K-tiled matmul, fused epilogue."""
    @pl.when(pl.program_id(1) == 0)
    def _():
        acc_ref[...] = jnp.zeros_like(acc_ref)

    acc_ref[...] += jnp.dot(
        x_ref[...], w_ref[...], preferred_element_type=jnp.float32
    )

    @pl.when(pl.program_id(1) == pl.num_programs(1) - 1)
    def _():
        y = acc_ref[...] + b_ref[...] + r_ref[...].astype(jnp.float32)
        mu = jnp.mean(y, axis=-1, keepdims=True)
        var = jnp.mean(jnp.square(y - mu), axis=-1, keepdims=True)  # biased, like torch
        y = (y - mu) * jax.lax.rsqrt(var + 1e-5)
        o_ref[...] = (y * g_ref[...] + bb_ref[...]).astype(o_ref.dtype)


def linear_res_ln(x2d, w, b, res2d, gamma, beta, *, out_dtype=jnp.bfloat16,
                  tm=256, tk=512):
    """LayerNorm(x2d @ w + b + res2d); w: (In, Out) bf16 pre-transposed."""
    M, In = x2d.shape
    Out = w.shape[1]
    tm = _pick_tile(M, tm, 8)
    tk = _pick_tile(In, tk, 128)
    grid = (M // tm, In // tk)
    # TODO(synk): grid-invariant blocks (b, gamma, beta) could be single-buffered
    # via pipeline_mode once verified on all generations; they are tiny anyway.
    return pl.pallas_call(
        _linear_res_ln_kernel,
        out_shape=jax.ShapeDtypeStruct((M, Out), out_dtype),
        grid=grid,
        in_specs=[
            pl.BlockSpec((tm, tk), lambda i, k: (i, k)),
            pl.BlockSpec((tk, Out), lambda i, k: (k, 0)),
            pl.BlockSpec((1, Out), lambda i, k: (0, 0)),
            pl.BlockSpec((tm, Out), lambda i, k: (i, 0)),
            pl.BlockSpec((1, Out), lambda i, k: (0, 0)),
            pl.BlockSpec((1, Out), lambda i, k: (0, 0)),
        ],
        out_specs=pl.BlockSpec((tm, Out), lambda i, k: (i, 0)),
        scratch_shapes=[pltpu.VMEM((tm, Out), jnp.float32)],
        compiler_params=_cparams("parallel", "arbitrary"),
    )(x2d, w, b.reshape(1, Out), res2d, gamma.reshape(1, Out), beta.reshape(1, Out))


def _ffn_res_ln_kernel(x_ref, w1_ref, b1_ref, w2_ref, b2_ref, r_ref, g_ref, bb_ref,
                       o_ref, h_acc):
    """o = LayerNorm(relu(x @ w1 + b1) @ w2 + b2 + residual), K-tiled on matmul 1."""
    k = pl.program_id(1)

    @pl.when(k == 0)
    def _():
        h_acc[...] = jnp.zeros_like(h_acc)

    h_acc[...] += jnp.dot(
        x_ref[...], w1_ref[...], preferred_element_type=jnp.float32
    )

    @pl.when(k == pl.num_programs(1) - 1)
    def _():
        h = jnp.maximum(h_acc[...] + b1_ref[...], 0.0)  # ReLU, f32
        y = jnp.dot(
            h.astype(jnp.bfloat16), w2_ref[...], preferred_element_type=jnp.float32
        ) + b2_ref[...]
        y = y + r_ref[...].astype(jnp.float32)          # residual
        mu = jnp.mean(y, axis=-1, keepdims=True)
        var = jnp.mean(jnp.square(y - mu), axis=-1, keepdims=True)
        y = (y - mu) * jax.lax.rsqrt(var + 1e-5)
        o_ref[...] = (y * g_ref[...] + bb_ref[...]).astype(o_ref.dtype)


def ffn_res_ln(x2d, w1, b1, w2, b2, gamma, beta, *, out_dtype=jnp.bfloat16,
               tm=256, tk=512):
    """Fused position-wise FFN + residual + LayerNorm (residual is x2d itself)."""
    M, E = x2d.shape
    Hid = w1.shape[1]
    tm = _pick_tile(M, tm, 8)
    tk = _pick_tile(E, tk, 128)
    grid = (M // tm, E // tk)
    # TODO(synk): for very large Hid*E on v7x (64 MiB VMEM) the resident bf16 w2
    # should be tiled along Hid in the epilogue (or fall back to two linears).
    return pl.pallas_call(
        _ffn_res_ln_kernel,
        out_shape=jax.ShapeDtypeStruct((M, E), out_dtype),
        grid=grid,
        in_specs=[
            pl.BlockSpec((tm, tk), lambda i, k: (i, k)),   # x (K-tiled)
            pl.BlockSpec((tk, Hid), lambda i, k: (k, 0)),  # w1 (bf16)
            pl.BlockSpec((1, Hid), lambda i, k: (0, 0)),   # b1
            pl.BlockSpec((Hid, E), lambda i, k: (0, 0)),   # w2 (bf16, resident)
            pl.BlockSpec((1, E), lambda i, k: (0, 0)),     # b2
            pl.BlockSpec((tm, E), lambda i, k: (i, 0)),    # residual rows of x
            pl.BlockSpec((1, E), lambda i, k: (0, 0)),     # gamma
            pl.BlockSpec((1, E), lambda i, k: (0, 0)),     # beta
        ],
        out_specs=pl.BlockSpec((tm, E), lambda i, k: (i, 0)),
        scratch_shapes=[pltpu.VMEM((tm, Hid), jnp.float32)],
        compiler_params=_cparams("parallel", "arbitrary"),
    )(x2d, w1, b1.reshape(1, Hid), w2, b2.reshape(1, E), x2d,
      gamma.reshape(1, E), beta.reshape(1, E))


# ----------------------------------------------------------------------------
# Flash-style multi-head attention
# grid = (batch, heads, kv_tiles); online softmax with m/l/acc VMEM scratch.
# ----------------------------------------------------------------------------
def _flash_attn_kernel(q_ref, k_ref, v_ref, kvalid_ref, o_ref,
                       m_ref, l_ref, acc_ref, *, scale, causal, tkv):
    kv = pl.program_id(2)

    @pl.when(kv == 0)
    def _():
        m_ref[...] = jnp.full_like(m_ref, -jnp.inf)
        l_ref[...] = jnp.zeros_like(l_ref)
        acc_ref[...] = jnp.zeros_like(acc_ref)

    # scores: (Lq, tkv) = q (Lq, D) . k (tkv, D), contracting D (no k.T needed)
    dn = (((1,), (1,)), ((), ()))
    s = jax.lax.dot_general(q_ref[...], k_ref[...], dn,
                            preferred_element_type=jnp.float32)

    # key-padding mask (from int32 validity row) + in-kernel causal mask
    mask = jnp.broadcast_to(kvalid_ref[...] != 0, s.shape)
    if causal:
        row = jax.lax.broadcasted_iota(jnp.int32, s.shape, 0)
        col = jax.lax.broadcasted_iota(jnp.int32, s.shape, 1) + kv * tkv
        mask = jnp.logical_and(mask, col <= row)
    # same op order as PyTorch: masked_fill(-1e20) first, then / sqrt(embed_size)
    s = jnp.where(mask, s, jnp.float32(-1e20)) * scale

    m_prev = m_ref[...]
    m_new = jnp.maximum(m_prev, jnp.max(s, axis=-1, keepdims=True))
    alpha = jnp.exp(m_prev - m_new)
    p = jnp.exp(s - m_new)
    l_ref[...] = alpha * l_ref[...] + jnp.sum(p, axis=-1, keepdims=True)
    acc_ref[...] = alpha * acc_ref[...] + jnp.dot(
        p.astype(v_ref.dtype), v_ref[...], preferred_element_type=jnp.float32
    )
    m_ref[...] = m_new

    @pl.when(kv == pl.num_programs(2) - 1)
    def _():
        o_ref[...] = (acc_ref[...] *
                      pl.reciprocal(l_ref[...], approx=True)).astype(o_ref.dtype)


def attention(q_buf, k_buf, v_buf, q_slot, k_slot, v_slot, kvalid,
              heads, causal, *, out_dtype=jnp.bfloat16, tkv=512):
    """Head-major flash attention.

    q_buf: (N, Sq, H, Lq, D); k_buf/v_buf: (N, Sk, H, Lk, D) (may alias q_buf);
    the *_slot ints pick the Q/K/V slice of a fused projection buffer via the
    BlockSpec index maps (no XLA slicing). kvalid: (N, 1, Lk) int32.
    Returns (N, H, Lq, D).
    """
    N, _, H, Lq, D = q_buf.shape
    Lk = k_buf.shape[3]
    scale = 1.0 / math.sqrt(H * D)  # PyTorch divides by sqrt(embed_size)
    tkv_b = _pick_tile(Lk, tkv, 128)
    grid = (N, H, Lk // tkv_b)
    # TODO(synk): no Lq tiling; add a q-block axis for very long query sequences.
    kern = functools.partial(_flash_attn_kernel, scale=scale, causal=causal,
                             tkv=tkv_b)
    return pl.pallas_call(
        kern,
        out_shape=jax.ShapeDtypeStruct((N, H, Lq, D), out_dtype),
        grid=grid,
        in_specs=[
            pl.BlockSpec((None, None, None, Lq, D),
                         lambda n, h, kv: (n, q_slot, h, 0, 0)),
            pl.BlockSpec((None, None, None, tkv_b, D),
                         lambda n, h, kv: (n, k_slot, h, kv, 0)),
            pl.BlockSpec((None, None, None, tkv_b, D),
                         lambda n, h, kv: (n, v_slot, h, kv, 0)),
            pl.BlockSpec((None, 1, tkv_b), lambda n, h, kv: (n, 0, kv)),
        ],
        out_specs=pl.BlockSpec((None, None, Lq, D), lambda n, h, kv: (n, h, 0, 0)),
        scratch_shapes=[
            pltpu.VMEM((Lq, 1), jnp.float32),   # running max
            pltpu.VMEM((Lq, 1), jnp.float32),   # running denom
            pltpu.VMEM((Lq, D), jnp.float32),   # output accumulator
        ],
        compiler_params=_cparams("parallel", "parallel", "arbitrary"),
    )(q_buf, k_buf, v_buf, kvalid)


# ----------------------------------------------------------------------------
# Module forward functions (glue around the kernels)
# ----------------------------------------------------------------------------
def _to_head_major(x2d, N, L, slots, heads):
    """(N*L, slots*heads*D) -> (N, slots, heads, L, D); one XLA layout copy."""
    D = x2d.shape[1] // (slots * heads)
    x = x2d.reshape(N, L, slots, heads, D)
    return jnp.transpose(x, (0, 2, 3, 1, 4))


def self_attention_ln_fwd(p, values, keys, query, kvalid, heads, causal,
                          residual, gamma, beta):
    """SelfAttention(...) followed by LayerNorm(attn + residual), fused fc_out."""
    N, Lq, E = query.shape
    Lk = keys.shape[1]
    if (query is keys) and (keys is values):
        # fused QKV projection; attention reads all three slots from one buffer
        qkv = linear(query.reshape(-1, E), p["w_qkv"], p["b_qkv"])
        qkv = _to_head_major(qkv, N, Lq, 3, heads)          # (N,3,H,Lq,D)
        ctx = attention(qkv, qkv, qkv, 0, 1, 2, kvalid, heads, causal)
    elif keys is values:
        q = _to_head_major(linear(query.reshape(-1, E), p["w_q"], p["b_q"]),
                           N, Lq, 1, heads)                 # (N,1,H,Lq,D)
        kv = _to_head_major(linear(keys.reshape(-1, E), p["w_kv"], p["b_kv"]),
                            N, Lk, 2, heads)                # (N,2,H,Lk,D)
        ctx = attention(q, kv, kv, 0, 0, 1, kvalid, heads, causal)
    else:
        q = _to_head_major(linear(query.reshape(-1, E), p["w_q"], p["b_q"]),
                           N, Lq, 1, heads)
        k = _to_head_major(linear(keys.reshape(-1, E), p["w_k"], p["b_k"]),
                           N, Lk, 1, heads)
        v = _to_head_major(linear(values.reshape(-1, E), p["w_v"], p["b_v"]),
                           N, Lk, 1, heads)
        ctx = attention(q, k, v, 0, 0, 0, kvalid, heads, causal)
    ctx2d = jnp.transpose(ctx, (0, 2, 1, 3)).reshape(N * Lq, E)  # back to (M,E)
    out = linear_res_ln(ctx2d, p["w_o"], p["b_o"],
                        residual.reshape(-1, E), gamma, beta)
    return out.reshape(N, Lq, E)


def transformer_block_fwd(p, value, key, query, kvalid, heads):
    N, L, E = query.shape
    x = self_attention_ln_fwd(p["attn"], value, key, query, kvalid, heads, False,
                              query, p["norm1"]["g"], p["norm1"]["b"])
    out = ffn_res_ln(x.reshape(-1, E), p["ff1_w"], p["ff1_b"],
                     p["ff2_w"], p["ff2_b"], p["norm2"]["g"], p["norm2"]["b"])
    return out.reshape(N, L, E)


def decoder_block_fwd(p, x, enc_out, src_kvalid, trg_kvalid, heads):
    query = self_attention_ln_fwd(p["attn"], x, x, x, trg_kvalid, heads, True,
                                  x, p["norm"]["g"], p["norm"]["b"])
    return transformer_block_fwd(p["tblock"], enc_out, enc_out, query,
                                 src_kvalid, heads)


def encoder_fwd(p, tokens, kvalid, heads):
    # TODO(synk): embedding gather stays in plain JAX (data-dependent gather,
    # not the hot path).
    N, L = tokens.shape
    positions = jnp.broadcast_to(jnp.arange(L), (N, L))
    out = jnp.take(p["word_emb"], tokens, axis=0) + jnp.take(
        p["pos_emb"], positions, axis=0
    )
    for layer in p["layers"]:
        out = transformer_block_fwd(layer, out, out, out, kvalid, heads)
    return out


def decoder_fwd(p, tokens, enc_out, src_kvalid, trg_kvalid, heads, trg_vocab):
    N, L = tokens.shape
    E = p["word_emb"].shape[1]
    positions = jnp.broadcast_to(jnp.arange(L), (N, L))
    x = jnp.take(p["word_emb"], tokens, axis=0) + jnp.take(
        p["pos_emb"], positions, axis=0
    )
    for layer in p["layers"]:
        x = decoder_block_fwd(layer, x, enc_out, src_kvalid, trg_kvalid, heads)
    # vocab projection uses a 128-padded weight; slice the logits back
    logits = linear(x.reshape(-1, E), p["fc_out"]["w"], p["fc_out"]["b"],
                    out_dtype=jnp.float32)
    vocab_padded = p["fc_out"]["w"].shape[1]
    return logits.reshape(N, L, vocab_padded)[..., :trg_vocab]


def transformer_fwd(params, src, trg, src_pad_idx, heads, trg_vocab):
    N, Ls = src.shape
    _, Lt = trg.shape
    # compact int32 key-validity vectors; causal mask is generated in-kernel
    src_kvalid = (src != src_pad_idx).astype(jnp.int32).reshape(N, 1, Ls)
    trg_kvalid = jnp.ones((N, 1, Lt), jnp.int32)
    enc_src = encoder_fwd(params["encoder"], src, src_kvalid, heads)
    return decoder_fwd(params["decoder"], trg, enc_src, src_kvalid, trg_kvalid,
                       heads, trg_vocab)


# ----------------------------------------------------------------------------
# Deterministic parameter init (shapes from the PyTorch __init__)
# Weights are stored pre-transposed (In, Out) and in bf16; fused QKV / KV
# copies are built once here so no transpose/concat runs per forward.
# ----------------------------------------------------------------------------
def init_linear(key, in_dim, out_dim):
    k1, k2 = jax.random.split(key)
    w = (0.05 * jax.random.normal(k1, (in_dim, out_dim), jnp.float32)
         ).astype(jnp.bfloat16)
    b = 0.01 * jax.random.normal(k2, (out_dim,), jnp.float32)
    return w, b


def init_attention(key, E):
    ks = jax.random.split(key, 4)
    wq, bq = init_linear(ks[0], E, E)
    wk, bk = init_linear(ks[1], E, E)
    wv, bv = init_linear(ks[2], E, E)
    wo, bo = init_linear(ks[3], E, E)
    return {
        "w_qkv": jnp.concatenate([wq, wk, wv], axis=1),
        "b_qkv": jnp.concatenate([bq, bk, bv], axis=0),
        "w_kv": jnp.concatenate([wk, wv], axis=1),
        "b_kv": jnp.concatenate([bk, bv], axis=0),
        "w_q": wq, "b_q": bq,
        "w_k": wk, "b_k": bk,
        "w_v": wv, "b_v": bv,
        "w_o": wo, "b_o": bo,
    }


def init_layernorm(E):
    return {"g": jnp.ones((E,), jnp.float32), "b": jnp.zeros((E,), jnp.float32)}


def init_transformer_block(key, E, FE):
    ks = jax.random.split(key, 3)
    w1, b1 = init_linear(ks[1], E, FE * E)
    w2, b2 = init_linear(ks[2], FE * E, E)
    return {
        "attn": init_attention(ks[0], E),
        "norm1": init_layernorm(E),
        "norm2": init_layernorm(E),
        "ff1_w": w1, "ff1_b": b1,
        "ff2_w": w2, "ff2_b": b2,
    }


def init_decoder_block(key, E, FE):
    ks = jax.random.split(key, 2)
    return {
        "norm": init_layernorm(E),
        "attn": init_attention(ks[0], E),
        "tblock": init_transformer_block(ks[1], E, FE),
    }


def init_transformer(key, src_vocab, trg_vocab, E, num_layers, FE, max_len):
    ke, kd, kwe, kpe, kwd, kpd, kfo = jax.random.split(key, 7)
    enc_layers = [
        init_transformer_block(k, E, FE) for k in jax.random.split(ke, num_layers)
    ]
    dec_layers = [
        init_decoder_block(k, E, FE) for k in jax.random.split(kd, num_layers)
    ]
    # pad the vocab projection to a multiple of 128 -> lane-dense output tiles
    wfo, bfo = init_linear(kfo, E, trg_vocab)
    vocab_padded = ((trg_vocab + 127) // 128) * 128
    wfo = jnp.pad(wfo, ((0, 0), (0, vocab_padded - trg_vocab)))
    bfo = jnp.pad(bfo, (0, vocab_padded - trg_vocab))
    encoder = {
        "word_emb": (0.05 * jax.random.normal(kwe, (src_vocab, E), jnp.float32)
                     ).astype(jnp.bfloat16),
        "pos_emb": (0.05 * jax.random.normal(kpe, (max_len, E), jnp.float32)
                    ).astype(jnp.bfloat16),
        "layers": enc_layers,
    }
    decoder = {
        "word_emb": (0.05 * jax.random.normal(kwd, (trg_vocab, E), jnp.float32)
                     ).astype(jnp.bfloat16),
        "pos_emb": (0.05 * jax.random.normal(kpd, (max_len, E), jnp.float32)
                    ).astype(jnp.bfloat16),
        "layers": dec_layers,
        "fc_out": {"w": wfo, "b": bfo},
    }
    return {"encoder": encoder, "decoder": decoder}


# ----------------------------------------------------------------------------
if __name__ == "__main__":
    # small shapes consistent with the module
    src_vocab, trg_vocab = 11, 13
    src_pad_idx = 0
    embed_size, heads, num_layers, forward_expansion, max_length = 32, 4, 2, 4, 16
    N, Ls, Lt = 2, 8, 8

    key = jax.random.PRNGKey(0)
    kp, ks, kt = jax.random.split(key, 3)
    params = init_transformer(
        kp, src_vocab, trg_vocab, embed_size, num_layers, forward_expansion,
        max_length
    )

    src = jax.random.randint(ks, (N, Ls), 1, src_vocab, dtype=jnp.int32)
    trg = jax.random.randint(kt, (N, Lt), 1, trg_vocab, dtype=jnp.int32)
    src = src.at[0, -1].set(src_pad_idx)  # exercise the padding mask

    fwd = jax.jit(transformer_fwd, static_argnums=(3, 4, 5))
    out = fwd(params, src, trg, src_pad_idx, heads, trg_vocab)
    out = jax.block_until_ready(out)

    assert out.shape == (N, Lt, trg_vocab), out.shape
    assert bool(jnp.all(jnp.isfinite(out)))
    print("KERNEL_OK")
</pallas_src>

<mosaic_0001>
module attributes {stable_mosaic.version = 11 : i64} {
  func.func @_linear_kernel(%arg0: i32, %arg1: i32, %arg2: i32, %arg3: memref<16x32xbf16, #tpu.memory_space<vmem>>, %arg4: memref<32x96xbf16, #tpu.memory_space<vmem>>, %arg5: memref<1x96xf32, #tpu.memory_space<vmem>>, %arg6: memref<16x96xbf16, #tpu.memory_space<vmem>>, %arg7: memref<16x96xf32, #tpu.memory_space<vmem>>) attributes {dimension_semantics = [#tpu.dimension_semantics<parallel>, #tpu.dimension_semantics<parallel>, #tpu.dimension_semantics<arbitrary>], iteration_bounds = array<i64: 1, 1, 1>, scalar_prefetch = 0 : i64, scratch_operands = 1 : i64, tpu.core_type = #tpu.core_type<tc>, window_params = [{transform_indices = @transform_0, window_bounds = array<i64: 16, 32>}, {transform_indices = @transform_1, window_bounds = array<i64: 32, 96>}, {transform_indices = @transform_2, window_bounds = array<i64: 1, 96>}, {transform_indices = @transform_3, window_bounds = array<i64: 16, 96>}]} {
    %c0_i32 = arith.constant 0 : i32
    %0 = arith.cmpi eq, %arg2, %c0_i32 : i32
    %1 = arith.extui %0 : i1 to i32
    %c0_i32_0 = arith.constant 0 : i32
    %2 = arith.cmpi ne, %1, %c0_i32_0 : i32
    scf.if %2 {
      %cst_10 = arith.constant 0.000000e+00 : f32
      %12 = vector.broadcast %cst_10 : f32 to vector<16x96xf32>
      %c0_11 = arith.constant 0 : index
      %c0_12 = arith.constant 0 : index
      %13 = vector.load %arg7[%c0_11, %c0_12] : memref<16x96xf32, #tpu.memory_space<vmem>>, vector<16x96xf32>
      tpu.vector_store %arg7[%c0_11, %c0_12], %12 {strides = array<i32>} : memref<16x96xf32, #tpu.memory_space<vmem>>, vector<16x96xf32>,
    } else {
    }
    %c0 = arith.constant 0 : index
    %c0_1 = arith.constant 0 : index
    %3 = vector.load %arg7[%c0, %c0_1] : memref<16x96xf32, #tpu.memory_space<vmem>>, vector<16x96xf32>
    %c0_2 = arith.constant 0 : index
    %c0_3 = arith.constant 0 : index
    %4 = vector.load %arg3[%c0_2, %c0_3] : memref<16x32xbf16, #tpu.memory_space<vmem>>, vector<16x32xbf16>
    %c0_4 = arith.constant 0 : index
    %c0_5 = arith.constant 0 : index
    %5 = vector.load %arg4[%c0_4, %c0_5] : memref<32x96xbf16, #tpu.memory_space<vmem>>, vector<32x96xbf16>
    %cst = arith.constant dense<0.000000e+00> : vector<16x96xf32>
    %6 = tpu.matmul %4, %5, %cst {dimension_numbers = #tpu.dot_dimension_numbers<[1], [0], [0], [1], [0, 0, 1, 1], [], []>} : vector<16x32xbf16>, vector<32x96xbf16>, vector<16x96xf32> -> vector<16x96xf32>
    %7 = arith.addf %3, %6 : vector<16x96xf32>
    %c0_6 = arith.constant 0 : index
    %c0_7 = arith.constant 0 : index
    %8 = vector.load %arg7[%c0_6, %c0_7] : memref<16x96xf32, #tpu.memory_space<vmem>>, vector<16x96xf32>
    tpu.vector_store %arg7[%c0_6, %c0_7], %7 {strides = array<i32>} : memref<16x96xf32, #tpu.memory_space<vmem>>, vector<16x96xf32>,
    %c0_i32_8 = arith.constant 0 : i32
    %9 = arith.cmpi eq, %arg2, %c0_i32_8 : i32
    %10 = arith.extui %9 : i1 to i32
    %c0_i32_9 = arith.constant 0 : i32
    %11 = arith.cmpi ne, %10, %c0_i32_9 : i32
    scf.if %11 {
      %c0_10 = arith.constant 0 : index
      %c0_11 = arith.constant 0 : index
      %12 = vector.load %arg7[%c0_10, %c0_11] : memref<16x96xf32, #tpu.memory_space<vmem>>, vector<16x96xf32>
      %c0_12 = arith.constant 0 : index
      %c0_13 = arith.constant 0 : index
      %13 = vector.load %arg5[%c0_12, %c0_13] : memref<1x96xf32, #tpu.memory_space<vmem>>, vector<1x96xf32>
      %14 = vector.broadcast %13 : vector<1x96xf32> to vector<16x96xf32>
      %15 = arith.addf %12, %14 : vector<16x96xf32>
      %16 = arith.truncf %15 : vector<16x96xf32> to vector<16x96xbf16>
      %c0_14 = arith.constant 0 : index
      %c0_15 = arith.constant 0 : index
      %17 = vector.load %arg6[%c0_14, %c0_15] : memref<16x96xbf16, #tpu.memory_space<vmem>>, vector<16x96xbf16>
      tpu.vector_store %arg6[%c0_14, %c0_15], %16 {strides = array<i32>} : memref<16x96xbf16, #tpu.memory_space<vmem>>, vector<16x96xbf16>,
    } else {
    }
    return
  }
  func.func @transform_0(%arg0: i32, %arg1: i32, %arg2: i32) -> (i32, i32) {
    %c0_i32 = arith.constant 0 : i32
    return %arg0, %arg2 : i32, i32
  }
  func.func @transform_1(%arg0: i32, %arg1: i32, %arg2: i32) -> (i32, i32) {
    %c0_i32 = arith.constant 0 : i32
    return %arg2, %arg1 : i32, i32
  }
  func.func @transform_2(%arg0: i32, %arg1: i32, %arg2: i32) -> (i32, i32) {
    %c0_i32 = arith.constant 0 : i32
    %c0_i32_0 = arith.constant 0 : i32
    return %c0_i32, %arg1 : i32, i32
  }
  func.func @transform_3(%arg0: i32, %arg1: i32, %arg2: i32) -> (i32, i32) {
    %c0_i32 = arith.constant 0 : i32
    return %arg0, %arg1 : i32, i32
  }
}

module attributes {stable_mosaic.version = 11 : i64} {
  func.func @_flash_attn_kernel(%arg0: i32, %arg1: i32, %arg2: i32, %arg3: memref<1x1x1x8x8xbf16, #tpu.memory_space<vmem>>, %arg4: memref<1x1x1x8x8xbf16, #tpu.memory_space<vmem>>, %arg5: memref<1x1x1x8x8xbf16, #tpu.memory_space<vmem>>, %arg6: memref<1x1x8xi32, #tpu.memory_space<vmem>>, %arg7: memref<1x1x8x8xbf16, #tpu.memory_space<vmem>>, %arg8: memref<8x1xf32, #tpu.memory_space<vmem>>, %arg9: memref<8x1xf32, #tpu.memory_space<vmem>>, %arg10: memref<8x8xf32, #tpu.memory_space<vmem>>) attributes {dimension_semantics = [#tpu.dimension_semantics<parallel>, #tpu.dimension_semantics<parallel>, #tpu.dimension_semantics<arbitrary>], iteration_bounds = array<i64: 2, 4, 1>, scalar_prefetch = 0 : i64, scratch_operands = 3 : i64, tpu.core_type = #tpu.core_type<tc>, window_params = [{transform_indices = @transform_0, window_bounds = array<i64: 1, 1, 1, 8, 8>}, {transform_indices = @transform_1, window_bounds = array<i64: 1, 1, 1, 8, 8>}, {transform_indices = @transform_2, window_bounds = array<i64: 1, 1, 1, 8, 8>}, {transform_indices = @transform_3, window_bounds = array<i64: 1, 1, 8>}, {transform_indices = @transform_4, window_bounds = array<i64: 1, 1, 8, 8>}]} {
    %c0_i32 = arith.constant 0 : i32
    %0 = arith.cmpi eq, %arg2, %c0_i32 : i32
    %1 = arith.extui %0 : i1 to i32
    %c0_i32_0 = arith.constant 0 : i32
    %2 = arith.cmpi ne, %1, %c0_i32_0 : i32
    scf.if %2 {
      %cst_38 = arith.constant 0xFF800000 : f32
      %53 = vector.broadcast %cst_38 : f32 to vector<8x1xf32>
      %c0_39 = arith.constant 0 : index
      %c0_40 = arith.constant 0 : index
      %54 = vector.load %arg8[%c0_39, %c0_40] : memref<8x1xf32, #tpu.memory_space<vmem>>, vector<8x1xf32>
      tpu.vector_store %arg8[%c0_39, %c0_40], %53 {strides = array<i32>} : memref<8x1xf32, #tpu.memory_space<vmem>>, vector<8x1xf32>,
      %cst_41 = arith.constant 0.000000e+00 : f32
      %55 = vector.broadcast %cst_41 : f32 to vector<8x1xf32>
      %c0_42 = arith.constant 0 : index
      %c0_43 = arith.constant 0 : index
      %56 = vector.load %arg9[%c0_42, %c0_43] : memref<8x1xf32, #tpu.memory_space<vmem>>, vector<8x1xf32>
      tpu.vector_store %arg9[%c0_42, %c0_43], %55 {strides = array<i32>} : memref<8x1xf32, #tpu.memory_space<vmem>>, vector<8x1xf32>,
      %cst_44 = arith.constant 0.000000e+00 : f32
      %57 = vector.broadcast %cst_44 : f32 to vector<8x8xf32>
      %c0_45 = arith.constant 0 : index
      %c0_46 = arith.constant 0 : index
      %58 = vector.load %arg10[%c0_45, %c0_46] : memref<8x8xf32, #tpu.memory_space<vmem>>, vector<8x8xf32>
      tpu.vector_store %arg10[%c0_45, %c0_46], %57 {strides = array<i32>} : memref<8x8xf32, #tpu.memory_space<vmem>>, vector<8x8xf32>,
    } else {
    }
    %c0 = arith.constant 0 : index
    %c0_1 = arith.constant 0 : index
    %c0_2 = arith.constant 0 : index
    %c0_3 = arith.constant 0 : index
    %c0_4 = arith.constant 0 : index
    %3 = vector.load %arg3[%c0, %c0_1, %c0_2, %c0_3, %c0_4] : memref<1x1x1x8x8xbf16, #tpu.memory_space<vmem>>, vector<1x1x1x8x8xbf16>
    %4 = vector.shape_cast %3 : vector<1x1x1x8x8xbf16> to vector<8x8xbf16>
    %c0_5 = arith.constant 0 : index
    %c0_6 = arith.constant 0 : index
    %c0_7 = arith.constant 0 : index
    %c0_8 = arith.constant 0 : index
    %c0_9 = arith.constant 0 : index
    %5 = vector.load %arg4[%c0_5, %c0_6, %c0_7, %c0_8, %c0_9] : memref<1x1x1x8x8xbf16, #tpu.memory_space<vmem>>, vector<1x1x1x8x8xbf16>
    %6 = vector.shape_cast %5 : vector<1x1x1x8x8xbf16> to vector<8x8xbf16>
    %cst = arith.constant dense<0.000000e+00> : vector<8x8xf32>
    %7 = tpu.matmul %4, %6, %cst {dimension_numbers = #tpu.dot_dimension_numbers<[1], [1], [0], [0], [0, 0, 1, 0], [], []>} : vector<8x8xbf16>, vector<8x8xbf16>, vector<8x8xf32> -> vector<8x8xf32>
    %c0_10 = arith.constant 0 : index
    %c0_11 = arith.constant 0 : index
    %c0_12 = arith.constant 0 : index
    %8 = vector.load %arg6[%c0_10, %c0_11, %c0_12] : memref<1x1x8xi32, #tpu.memory_space<vmem>>, vector<1x1x8xi32>
    %9 = vector.shape_cast %8 : vector<1x1x8xi32> to vector<1x8xi32>
    %c0_i32_13 = arith.constant 0 : i32
    %10 = vector.broadcast %c0_i32_13 : i32 to vector<1x8xi32>
    %11 = arith.cmpi ne, %9, %10 : vector<1x8xi32>
    %12 = vector.shape_cast %11 : vector<1x8xi1> to vector<1x8xi1>
    %13 = vector.broadcast %12 : vector<1x8xi1> to vector<8x8xi1>
    %14 = tpu.iota {dimensions = array<i32: 0>} : vector<8x8xi32>
    %15 = tpu.iota {dimensions = array<i32: 1>} : vector<8x8xi32>
    %c8_i32 = arith.constant 8 : i32
    %16 = arith.muli %arg2, %c8_i32 : i32
    %17 = vector.broadcast %16 : i32 to vector<8x8xi32>
    %18 = arith.addi %15, %17 : vector<8x8xi32>
    %19 = arith.cmpi sle, %18, %14 : vector<8x8xi32>
    %20 = arith.andi %13, %19 : vector<8x8xi1>
    %cst_14 = arith.constant -1.000000e+20 : f32
    %21 = vector.broadcast %cst_14 : f32 to vector<8x8xf32>
    %22 = arith.select %20, %7, %21 : vector<8x8xi1>, vector<8x8xf32>
    %cst_15 = arith.constant 0.176776692 : f32
    %23 = vector.broadcast %cst_15 : f32 to vector<8x8xf32>
    %24 = arith.mulf %22, %23 : vector<8x8xf32>
    %c0_16 = arith.constant 0 : index
    %c0_17 = arith.constant 0 : index
    %25 = vector.load %arg8[%c0_16, %c0_17] : memref<8x1xf32, #tpu.memory_space<vmem>>, vector<8x1xf32>
    %cst_18 = arith.constant dense<0xFF800000> : vector<8xf32>
    %26 = vector.multi_reduction <maximumf>, %24, %cst_18 [1] : vector<8x8xf32> to vector<8xf32>
    %27 = vector.shape_cast %26 : vector<8xf32> to vector<8x1xf32>
    %28 = arith.maximumf %25, %27 : vector<8x1xf32>
    %29 = arith.subf %25, %28 : vector<8x1xf32>
    %30 = math.exp %29 : vector<8x1xf32>
    %31 = vector.broadcast %28 : vector<8x1xf32> to vector<8x8xf32>
    %32 = arith.subf %24, %31 : vector<8x8xf32>
    %33 = math.exp %32 : vector<8x8xf32>
    %c0_19 = arith.constant 0 : index
    %c0_20 = arith.constant 0 : index
    %34 = vector.load %arg9[%c0_19, %c0_20] : memref<8x1xf32, #tpu.memory_space<vmem>>, vector<8x1xf32>
    %35 = arith.mulf %30, %34 : vector<8x1xf32>
    %cst_21 = arith.constant dense<0.000000e+00> : vector<8xf32>
    %36 = vector.multi_reduction <add>, %33, %cst_21 [1] : vector<8x8xf32> to vector<8xf32>
    %37 = vector.shape_cast %36 : vector<8xf32> to vector<8x1xf32>
    %38 = arith.addf %35, %37 : vector<8x1xf32>
    %c0_22 = arith.constant 0 : index
    %c0_23 = arith.constant 0 : index
    %39 = vector.load %arg9[%c0_22, %c0_23] : memref<8x1xf32, #tpu.memory_space<vmem>>, vector<8x1xf32>
    tpu.vector_store %arg9[%c0_22, %c0_23], %38 {strides = array<i32>} : memref<8x1xf32, #tpu.memory_space<vmem>>, vector<8x1xf32>,
    %c0_24 = arith.constant 0 : index
    %c0_25 = arith.constant 0 : index
    %40 = vector.load %arg10[%c0_24, %c0_25] : memref<8x8xf32, #tpu.memory_space<vmem>>, vector<8x8xf32>
    %41 = vector.broadcast %30 : vector<8x1xf32> to vector<8x8xf32>
    %42 = arith.mulf %41, %40 : vector<8x8xf32>
    %43 = arith.truncf %33 : vector<8x8xf32> to vector<8x8xbf16>
    %c0_26 = arith.constant 0 : index
    %c0_27 = arith.constant 0 : index
    %c0_28 = arith.constant 0 : index
    %c0_29 = arith.constant 0 : index
    %c0_30 = arith.constant 0 : index
    %44 = vector.load %arg5[%c0_26, %c0_27, %c0_28, %c0_29, %c0_30] : memref<1x1x1x8x8xbf16, #tpu.memory_space<vmem>>, vector<1x1x1x8x8xbf16>
    %45 = vector.shape_cast %44 : vector<1x1x1x8x8xbf16> to vector<8x8xbf16>
    %cst_31 = arith.constant dense<0.000000e+00> : vector<8x8xf32>
    %46 = tpu.matmul %43, %45, %cst_31 {dimension_numbers = #tpu.dot_dimension_numbers<[1], [0], [0], [1], [0, 0, 1, 1], [], []>} : vector<8x8xbf16>, vector<8x8xbf16>, vector<8x8xf32> -> vector<8x8xf32>
    %47 = arith.addf %42, %46 : vector<8x8xf32>
    %c0_32 = arith.constant 0 : index
    %c0_33 = arith.constant 0 : index
    %48 = vector.load %arg10[%c0_32, %c0_33] : memref<8x8xf32, #tpu.memory_space<vmem>>, vector<8x8xf32>
    tpu.vector_store %arg10[%c0_32, %c0_33], %47 {strides = array<i32>} : memref<8x8xf32, #tpu.memory_space<vmem>>, vector<8x8xf32>,
    %c0_34 = arith.constant 0 : index
    %c0_35 = arith.constant 0 : index
    %49 = vector.load %arg8[%c0_34, %c0_35] : memref<8x1xf32, #tpu.memory_space<vmem>>, vector<8x1xf32>
    tpu.vector_store %arg8[%c0_34, %c0_35], %28 {strides = array<i32>} : memref<8x1xf32, #tpu.memory_space<vmem>>, vector<8x1xf32>,
    %c0_i32_36 = arith.constant 0 : i32
    %50 = arith.cmpi eq, %arg2, %c0_i32_36 : i32
    %51 = arith.extui %50 : i1 to i32
    %c0_i32_37 = arith.constant 0 : i32
    %52 = arith.cmpi ne, %51, %c0_i32_37 : i32
    scf.if %52 {
      %c0_38 = arith.constant 0 : index
      %c0_39 = arith.constant 0 : index
      %53 = vector.load %arg10[%c0_38, %c0_39] : memref<8x8xf32, #tpu.memory_space<vmem>>, vector<8x8xf32>
      %c0_40 = arith.constant 0 : index
      %c0_41 = arith.constant 0 : index
      %54 = vector.load %arg9[%c0_40, %c0_41] : memref<8x1xf32, #tpu.memory_space<vmem>>, vector<8x1xf32>
      %55 = tpu.reciprocal %54 {approx = true} : vector<8x1xf32> -> vector<8x1xf32>
      %56 = vector.broadcast %55 : vector<8x1xf32> to vector<8x8xf32>
      %57 = arith.mulf %53, %56 : vector<8x8xf32>
      %58 = arith.truncf %57 : vector<8x8xf32> to vector<8x8xbf16>
      %c0_42 = arith.constant 0 : index
      %c0_43 = arith.constant 0 : index
      %c0_44 = arith.constant 0 : index
      %c0_45 = arith.constant 0 : index
      %59 = vector.load %arg7[%c0_42, %c0_43, %c0_44, %c0_45] : memref<1x1x8x8xbf16, #tpu.memory_space<vmem>>, vector<1x1x8x8xbf16>
      %60 = vector.shape_cast %59 : vector<1x1x8x8xbf16> to vector<8x8xbf16>
      %61 = vector.shape_cast %58 : vector<8x8xbf16> to vector<1x1x8x8xbf16>
      tpu.vector_store %arg7[%c0_42, %c0_43, %c0_44, %c0_45], %61 {strides = array<i32>} : memref<1x1x8x8xbf16, #tpu.memory_space<vmem>>, vector<1x1x8x8xbf16>,
    } else {
    }
    return
  }
  func.func @transform_0(%arg0: i32, %arg1: i32, %arg2: i32) -> (i32, i32, i32, i32, i32) {
    %c0_i32 = arith.constant 0 : i32
    %c0_i32_0 = arith.constant 0 : i32
    %c0_i32_1 = arith.constant 0 : i32
    %c0_i32_2 = arith.constant 0 : i32
    return %arg0, %c0_i32, %arg1, %c0_i32_0, %c0_i32_1 : i32, i32, i32, i32, i32
  }
  func.func @transform_1(%arg0: i32, %arg1: i32, %arg2: i32) -> (i32, i32, i32, i32, i32) {
    %c1_i32 = arith.constant 1 : i32
    %c0_i32 = arith.constant 0 : i32
    %c0_i32_0 = arith.constant 0 : i32
    return %arg0, %c1_i32, %arg1, %arg2, %c0_i32 : i32, i32, i32, i32, i32
  }
  func.func @transform_2(%arg0: i32, %arg1: i32, %arg2: i32) -> (i32, i32, i32, i32, i32) {
    %c2_i32 = arith.constant 2 : i32
    %c0_i32 = arith.constant 0 : i32
    %c0_i32_0 = arith.constant 0 : i32
    return %arg0, %c2_i32, %arg1, %arg2, %c0_i32 : i32, i32, i32, i32, i32
  }
  func.func @transform_3(%arg0: i32, %arg1: i32, %arg2: i32) -> (i32, i32, i32) {
    %c0_i32 = arith.constant 0 : i32
    %c0_i32_0 = arith.constant 0 : i32
    return %arg0, %c0_i32, %arg2 : i32, i32, i32
  }
  func.func @transform_4(%arg0: i32, %arg1: i32, %arg2: i32) -> (i32, i32, i32, i32) {
    %c0_i32 = arith.constant 0 : i32
    %c0_i32_0 = arith.constant 0 : i32
    %c0_i32_1 = arith.constant 0 : i32
    return %arg0, %arg1, %c0_i32, %c0_i32_0 : i32, i32, i32, i32
  }
}

module attributes {stable_mosaic.version = 11 : i64} {
  func.func @_linear_res_ln_kernel(%arg0: i32, %arg1: i32, %arg2: memref<16x32xbf16, #tpu.memory_space<vmem>>, %arg3: memref<32x32xbf16, #tpu.memory_space<vmem>>, %arg4: memref<1x32xf32, #tpu.memory_space<vmem>>, %arg5: memref<16x32xbf16, #tpu.memory_space<vmem>>, %arg6: memref<1x32xf32, #tpu.memory_space<vmem>>, %arg7: memref<1x32xf32, #tpu.memory_space<vmem>>, %arg8: memref<16x32xbf16, #tpu.memory_space<vmem>>, %arg9: memref<16x32xf32, #tpu.memory_space<vmem>>) attributes {dimension_semantics = [#tpu.dimension_semantics<parallel>, #tpu.dimension_semantics<arbitrary>], iteration_bounds = array<i64: 1, 1>, scalar_prefetch = 0 : i64, scratch_operands = 1 : i64, tpu.core_type = #tpu.core_type<tc>, window_params = [{transform_indices = @transform_0, window_bounds = array<i64: 16, 32>}, {transform_indices = @transform_1, window_bounds = array<i64: 32, 32>}, {pipeline_mode = #tpu.pipeline_mode<synchronous>, transform_indices = @transform_2, window_bounds = array<i64: 1, 32>}, {transform_indices = @transform_3, window_bounds = array<i64: 16, 32>}, {pipeline_mode = #tpu.pipeline_mode<synchronous>, transform_indices = @transform_4, window_bounds = array<i64: 1, 32>}, {pipeline_mode = #tpu.pipeline_mode<synchronous>, transform_indices = @transform_5, window_bounds = array<i64: 1, 32>}, {transform_indices = @transform_6, window_bounds = array<i64: 16, 32>}]} {
    %c0_i32 = arith.constant 0 : i32
    %0 = arith.cmpi eq, %arg1, %c0_i32 : i32
    %1 = arith.extui %0 : i1 to i32
    %c0_i32_0 = arith.constant 0 : i32
    %2 = arith.cmpi ne, %1, %c0_i32_0 : i32
    scf.if %2 {
      %cst_10 = arith.constant 0.000000e+00 : f32
      %12 = vector.broadcast %cst_10 : f32 to vector<16x32xf32>
      %c0_11 = arith.constant 0 : index
      %c0_12 = arith.constant 0 : index
      %13 = vector.load %arg9[%c0_11, %c0_12] : memref<16x32xf32, #tpu.memory_space<vmem>>, vector<16x32xf32>
      tpu.vector_store %arg9[%c0_11, %c0_12], %12 {strides = array<i32>} : memref<16x32xf32, #tpu.memory_space<vmem>>, vector<16x32xf32>,
    } else {
    }
    %c0 = arith.constant 0 : index
    %c0_1 = arith.constant 0 : index
    %3 = vector.load %arg9[%c0, %c0_1] : memref<16x32xf32, #tpu.memory_space<vmem>>, vector<16x32xf32>
    %c0_2 = arith.constant 0 : index
    %c0_3 = arith.constant 0 : index
    %4 = vector.load %arg2[%c0_2, %c0_3] : memref<16x32xbf16, #tpu.memory_space<vmem>>, vector<16x32xbf16>
    %c0_4 = arith.constant 0 : index
    %c0_5 = arith.constant 0 : index
    %5 = vector.load %arg3[%c0_4, %c0_5] : memref<32x32xbf16, #tpu.memory_space<vmem>>, vector<32x32xbf16>
    %cst = arith.constant dense<0.000000e+00> : vector<16x32xf32>
    %6 = tpu.matmul %4, %5, %cst {dimension_numbers = #tpu.dot_dimension_numbers<[1], [0], [0], [1], [0, 0, 1, 1], [], []>} : vector<16x32xbf16>, vector<32x32xbf16>, vector<16x32xf32> -> vector<16x32xf32>
    %7 = arith.addf %3, %6 : vector<16x32xf32>
    %c0_6 = arith.constant 0 : index
    %c0_7 = arith.constant 0 : index
    %8 = vector.load %arg9[%c0_6, %c0_7] : memref<16x32xf32, #tpu.memory_space<vmem>>, vector<16x32xf32>
    tpu.vector_store %arg9[%c0_6, %c0_7], %7 {strides = array<i32>} : memref<16x32xf32, #tpu.memory_space<vmem>>, vector<16x32xf32>,
    %c0_i32_8 = arith.constant 0 : i32
    %9 = arith.cmpi eq, %arg1, %c0_i32_8 : i32
    %10 = arith.extui %9 : i1 to i32
    %c0_i32_9 = arith.constant 0 : i32
    %11 = arith.cmpi ne, %10, %c0_i32_9 : i32
    scf.if %11 {
      %c0_10 = arith.constant 0 : index
      %c0_11 = arith.constant 0 : index
      %12 = vector.load %arg9[%c0_10, %c0_11] : memref<16x32xf32, #tpu.memory_space<vmem>>, vector<16x32xf32>
      %c0_12 = arith.constant 0 : index
      %c0_13 = arith.constant 0 : index
      %13 = vector.load %arg4[%c0_12, %c0_13] : memref<1x32xf32, #tpu.memory_space<vmem>>, vector<1x32xf32>
      %14 = vector.broadcast %13 : vector<1x32xf32> to vector<16x32xf32>
      %15 = arith.addf %12, %14 : vector<16x32xf32>
      %c0_14 = arith.constant 0 : index
      %c0_15 = arith.constant 0 : index
      %16 = vector.load %arg5[%c0_14, %c0_15] : memref<16x32xbf16, #tpu.memory_space<vmem>>, vector<16x32xbf16>
      %17 = arith.extf %16 : vector<16x32xbf16> to vector<16x32xf32>
      %18 = arith.addf %15, %17 : vector<16x32xf32>
      %cst_16 = arith.constant dense<0.000000e+00> : vector<16xf32>
      %19 = vector.multi_reduction <add>, %18, %cst_16 [1] : vector<16x32xf32> to vector<16xf32>
      %20 = vector.shape_cast %19 : vector<16xf32> to vector<16x1xf32>
      %cst_17 = arith.constant 3.200000e+01 : f32
      %21 = vector.broadcast %cst_17 : f32 to vector<16x1xf32>
      %22 = arith.divf %20, %21 : vector<16x1xf32>
      %23 = vector.broadcast %22 : vector<16x1xf32> to vector<16x32xf32>
      %24 = arith.subf %18, %23 : vector<16x32xf32>
      %25 = arith.mulf %24, %24 : vector<16x32xf32>
      %cst_18 = arith.constant dense<0.000000e+00> : vector<16xf32>
      %26 = vector.multi_reduction <add>, %25, %cst_18 [1] : vector<16x32xf32> to vector<16xf32>
      %27 = vector.shape_cast %26 : vector<16xf32> to vector<16x1xf32>
      %cst_19 = arith.constant 3.200000e+01 : f32
      %28 = vector.broadcast %cst_19 : f32 to vector<16x1xf32>
      %29 = arith.divf %27, %28 : vector<16x1xf32>
      %30 = vector.broadcast %22 : vector<16x1xf32> to vector<16x32xf32>
      %31 = arith.subf %18, %30 : vector<16x32xf32>
      %cst_20 = arith.constant 9.99999974E-6 : f32
      %32 = vector.broadcast %cst_20 : f32 to vector<16x1xf32>
      %33 = arith.addf %29, %32 : vector<16x1xf32>
      %34 = math.rsqrt %33 : vector<16x1xf32>
      %35 = vector.broadcast %34 : vector<16x1xf32> to vector<16x32xf32>
      %36 = arith.mulf %31, %35 : vector<16x32xf32>
      %c0_21 = arith.constant 0 : index
      %c0_22 = arith.constant 0 : index
      %37 = vector.load %arg6[%c0_21, %c0_22] : memref<1x32xf32, #tpu.memory_space<vmem>>, vector<1x32xf32>
      %38 = vector.broadcast %37 : vector<1x32xf32> to vector<16x32xf32>
      %39 = arith.mulf %36, %38 : vector<16x32xf32>
      %c0_23 = arith.constant 0 : index
      %c0_24 = arith.constant 0 : index
      %40 = vector.load %arg7[%c0_23, %c0_24] : memref<1x32xf32, #tpu.memory_space<vmem>>, vector<1x32xf32>
      %41 = vector.broadcast %40 : vector<1x32xf32> to vector<16x32xf32>
      %42 = arith.addf %39, %41 : vector<16x32xf32>
      %43 = arith.truncf %42 : vector<16x32xf32> to vector<16x32xbf16>
      %c0_25 = arith.constant 0 : index
      %c0_26 = arith.constant 0 : index
      %44 = vector.load %arg8[%c0_25, %c0_26] : memref<16x32xbf16, #tpu.memory_space<vmem>>, vector<16x32xbf16>
      tpu.vector_store %arg8[%c0_25, %c0_26], %43 {strides = array<i32>} : memref<16x32xbf16, #tpu.memory_space<vmem>>, vector<16x32xbf16>,
    } else {
    }
    return
  }
  func.func @transform_0(%arg0: i32, %arg1: i32) -> (i32, i32) {
    %c0_i32 = arith.constant 0 : i32
    return %arg0, %arg1 : i32, i32
  }
  func.func @transform_1(%arg0: i32, %arg1: i32) -> (i32, i32) {
    %c0_i32 = arith.constant 0 : i32
    %c0_i32_0 = arith.constant 0 : i32
    return %arg1, %c0_i32 : i32, i32
  }
  func.func @transform_2(%arg0: i32, %arg1: i32) -> (i32, i32) {
    %c0_i32 = arith.constant 0 : i32
    %c0_i32_0 = arith.constant 0 : i32
    %c0_i32_1 = arith.constant 0 : i32
    return %c0_i32, %c0_i32_0 : i32, i32
  }
  func.func @transform_3(%arg0: i32, %arg1: i32) -> (i32, i32) {
    %c0_i32 = arith.constant 0 : i32
    %c0_i32_0 = arith.constant 0 : i32
    return %arg0, %c0_i32 : i32, i32
  }
  func.func @transform_4(%arg0: i32, %arg1: i32) -> (i32, i32) {
    %c0_i32 = arith.constant 0 : i32
    %c0_i32_0 = arith.constant 0 : i32
    %c0_i32_1 = arith.constant 0 : i32
    return %c0_i32, %c0_i32_0 : i32, i32
  }
  func.func @transform_5(%arg0: i32, %arg1: i32) -> (i32, i32) {
    %c0_i32 = arith.constant 0 : i32
    %c0_i32_0 = arith.constant 0 : i32
    %c0_i32_1 = arith.constant 0 : i32
    return %c0_i32, %c0_i32_0 : i32, i32
  }
  func.func @transform_6(%arg0: i32, %arg1: i32) -> (i32, i32) {
    %c0_i32 = arith.constant 0 : i32
    %c0_i32_0 = arith.constant 0 : i32
    return %arg0, %c0_i32 : i32, i32
  }
}

module attributes {stable_mosaic.version = 11 : i64} {
  func.func @_linear_kernel(%arg0: i32, %arg1: i32, %arg2: i32, %arg3: memref<16x32xbf16, #tpu.memory_space<vmem>>, %arg4: memref<32x32xbf16, #tpu.memory_space<vmem>>, %arg5: memref<1x32xf32, #tpu.memory_space<vmem>>, %arg6: memref<16x32xbf16, #tpu.memory_space<vmem>>, %arg7: memref<16x32xf32, #tpu.memory_space<vmem>>) attributes {dimension_semantics = [#tpu.dimension_semantics<parallel>, #tpu.dimension_semantics<parallel>, #tpu.dimension_semantics<arbitrary>], iteration_bounds = array<i64: 1, 1, 1>, scalar_prefetch = 0 : i64, scratch_operands = 1 : i64, tpu.core_type = #tpu.core_type<tc>, window_params = [{transform_indices = @transform_0, window_bounds = array<i64: 16, 32>}, {transform_indices = @transform_1, window_bounds = array<i64: 32, 32>}, {transform_indices = @transform_2, window_bounds = array<i64: 1, 32>}, {transform_indices = @transform_3, window_bounds = array<i64: 16, 32>}]} {
    %c0_i32 = arith.constant 0 : i32
    %0 = arith.cmpi eq, %arg2, %c0_i32 : i32
    %1 = arith.extui %0 : i1 to i32
    %c0_i32_0 = arith.constant 0 : i32
    %2 = arith.cmpi ne, %1, %c0_i32_0 : i32
    scf.if %2 {
      %cst_10 = arith.constant 0.000000e+00 : f32
      %12 = vector.broadcast %cst_10 : f32 to vector<16x32xf32>
      %c0_11 = arith.constant 0 : index
      %c0_12 = arith.constant 0 : index
      %13 = vector.load %arg7[%c0_11, %c0_12] : memref<16x32xf32, #tpu.memory_space<vmem>>, vector<16x32xf32>
      tpu.vector_store %arg7[%c0_11, %c0_12], %12 {strides = array<i32>} : memref<16x32xf32, #tpu.memory_space<vmem>>, vector<16x32xf32>,
    } else {
    }
    %c0 = arith.constant 0 : index
    %c0_1 = arith.constant 0 : index
    %3 = vector.load %arg7[%c0, %c0_1] : memref<16x32xf32, #tpu.memory_space<vmem>>, vector<16x32xf32>
    %c0_2 = arith.constant 0 : index
    %c0_3 = arith.constant 0 : index
    %4 = vector.load %arg3[%c0_2, %c0_3] : memref<16x32xbf16, #tpu.memory_space<vmem>>, vector<16x32xbf16>
    %c0_4 = arith.constant 0 : index
    %c0_5 = arith.constant 0 : index
    %5 = vector.load %arg4[%c0_4, %c0_5] : memref<32x32xbf16, #tpu.memory_space<vmem>>, vector<32x32xbf16>
    %cst = arith.constant dense<0.000000e+00> : vector<16x32xf32>
    %6 = tpu.matmul %4, %5, %cst {dimension_numbers = #tpu.dot_dimension_numbers<[1], [0], [0], [1], [0, 0, 1, 1], [], []>} : vector<16x32xbf16>, vector<32x32xbf16>, vector<16x32xf32> -> vector<16x32xf32>
    %7 = arith.addf %3, %6 : vector<16x32xf32>
    %c0_6 = arith.constant 0 : index
    %c0_7 = arith.constant 0 : index
    %8 = vector.load %arg7[%c0_6, %c0_7] : memref<16x32xf32, #tpu.memory_space<vmem>>, vector<16x32xf32>
    tpu.vector_store %arg7[%c0_6, %c0_7], %7 {strides = array<i32>} : memref<16x32xf32, #tpu.memory_space<vmem>>, vector<16x32xf32>,
    %c0_i32_8 = arith.constant 0 : i32
    %9 = arith.cmpi eq, %arg2, %c0_i32_8 : i32
    %10 = arith.extui %9 : i1 to i32
    %c0_i32_9 = arith.constant 0 : i32
    %11 = arith.cmpi ne, %10, %c0_i32_9 : i32
    scf.if %11 {
      %c0_10 = arith.constant 0 : index
      %c0_11 = arith.constant 0 : index
      %12 = vector.load %arg7[%c0_10, %c0_11] : memref<16x32xf32, #tpu.memory_space<vmem>>, vector<16x32xf32>
      %c0_12 = arith.constant 0 : index
      %c0_13 = arith.constant 0 : index
      %13 = vector.load %arg5[%c0_12, %c0_13] : memref<1x32xf32, #tpu.memory_space<vmem>>, vector<1x32xf32>
      %14 = vector.broadcast %13 : vector<1x32xf32> to vector<16x32xf32>
      %15 = arith.addf %12, %14 : vector<16x32xf32>
      %16 = arith.truncf %15 : vector<16x32xf32> to vector<16x32xbf16>
      %c0_14 = arith.constant 0 : index
      %c0_15 = arith.constant 0 : index
      %17 = vector.load %arg6[%c0_14, %c0_15] : memref<16x32xbf16, #tpu.memory_space<vmem>>, vector<16x32xbf16>
      tpu.vector_store %arg6[%c0_14, %c0_15], %16 {strides = array<i32>} : memref<16x32xbf16, #tpu.memory_space<vmem>>, vector<16x32xbf16>,
    } else {
    }
    return
  }
  func.func @transform_0(%arg0: i32, %arg1: i32, %arg2: i32) -> (i32, i32) {
    %c0_i32 = arith.constant 0 : i32
    return %arg0, %arg2 : i32, i32
  }
  func.func @transform_1(%arg0: i32, %arg1: i32, %arg2: i32) -> (i32, i32) {
    %c0_i32 = arith.constant 0 : i32
    return %arg2, %arg1 : i32, i32
  }
  func.func @transform_2(%arg0: i32, %arg1: i32, %arg2: i32) -> (i32, i32) {
    %c0_i32 = arith.constant 0 : i32
    %c0_i32_0 = arith.constant 0 : i32
    return %c0_i32, %arg1 : i32, i32
  }
  func.func @transform_3(%arg0: i32, %arg1: i32, %arg2: i32) -> (i32, i32) {
    %c0_i32 = arith.constant 0 : i32
    return %arg0, %arg1 : i32, i32
  }
}

module attributes {stable_mosaic.version = 11 : i64} {
  func.func @_flash_attn_kernel(%arg0: i32, %arg1: i32, %arg2: i32, %arg3: memref<1x1x1x8x8xbf16, #tpu.memory_space<vmem>>, %arg4: memref<1x1x1x8x8xbf16, #tpu.memory_space<vmem>>, %arg5: memref<1x1x1x8x8xbf16, #tpu.memory_space<vmem>>, %arg6: memref<1x1x8xi32, #tpu.memory_space<vmem>>, %arg7: memref<1x1x8x8xbf16, #tpu.memory_space<vmem>>, %arg8: memref<8x1xf32, #tpu.memory_space<vmem>>, %arg9: memref<8x1xf32, #tpu.memory_space<vmem>>, %arg10: memref<8x8xf32, #tpu.memory_space<vmem>>) attributes {dimension_semantics = [#tpu.dimension_semantics<parallel>, #tpu.dimension_semantics<parallel>, #tpu.dimension_semantics<arbitrary>], iteration_bounds = array<i64: 2, 4, 1>, scalar_prefetch = 0 : i64, scratch_operands = 3 : i64, tpu.core_type = #tpu.core_type<tc>, window_params = [{transform_indices = @transform_0, window_bounds = array<i64: 1, 1, 1, 8, 8>}, {transform_indices = @transform_1, window_bounds = array<i64: 1, 1, 1, 8, 8>}, {transform_indices = @transform_2, window_bounds = array<i64: 1, 1, 1, 8, 8>}, {transform_indices = @transform_3, window_bounds = array<i64: 1, 1, 8>}, {transform_indices = @transform_4, window_bounds = array<i64: 1, 1, 8, 8>}]} {
    %c0_i32 = arith.constant 0 : i32
    %0 = arith.cmpi eq, %arg2, %c0_i32 : i32
    %1 = arith.extui %0 : i1 to i32
    %c0_i32_0 = arith.constant 0 : i32
    %2 = arith.cmpi ne, %1, %c0_i32_0 : i32
    scf.if %2 {
      %cst_38 = arith.constant 0xFF800000 : f32
      %46 = vector.broadcast %cst_38 : f32 to vector<8x1xf32>
      %c0_39 = arith.constant 0 : index
      %c0_40 = arith.constant 0 : index
      %47 = vector.load %arg8[%c0_39, %c0_40] : memref<8x1xf32, #tpu.memory_space<vmem>>, vector<8x1xf32>
      tpu.vector_store %arg8[%c0_39, %c0_40], %46 {strides = array<i32>} : memref<8x1xf32, #tpu.memory_space<vmem>>, vector<8x1xf32>,
      %cst_41 = arith.constant 0.000000e+00 : f32
      %48 = vector.broadcast %cst_41 : f32 to vector<8x1xf32>
      %c0_42 = arith.constant 0 : index
      %c0_43 = arith.constant 0 : index
      %49 = vector.load %arg9[%c0_42, %c0_43] : memref<8x1xf32, #tpu.memory_space<vmem>>, vector<8x1xf32>
      tpu.vector_store %arg9[%c0_42, %c0_43], %48 {strides = array<i32>} : memref<8x1xf32, #tpu.memory_space<vmem>>, vector<8x1xf32>,
      %cst_44 = arith.constant 0.000000e+00 : f32
      %50 = vector.broadcast %cst_44 : f32 to vector<8x8xf32>
      %c0_45 = arith.constant 0 : index
      %c0_46 = arith.constant 0 : index
      %51 = vector.load %arg10[%c0_45, %c0_46] : memref<8x8xf32, #tpu.memory_space<vmem>>, vector<8x8xf32>
      tpu.vector_store %arg10[%c0_45, %c0_46], %50 {strides = array<i32>} : memref<8x8xf32, #tpu.memory_space<vmem>>, vector<8x8xf32>,
    } else {
    }
    %c0 = arith.constant 0 : index
    %c0_1 = arith.constant 0 : index
    %c0_2 = arith.constant 0 : index
    %c0_3 = arith.constant 0 : index
    %c0_4 = arith.constant 0 : index
    %3 = vector.load %arg3[%c0, %c0_1, %c0_2, %c0_3, %c0_4] : memref<1x1x1x8x8xbf16, #tpu.memory_space<vmem>>, vector<1x1x1x8x8xbf16>
    %4 = vector.shape_cast %3 : vector<1x1x1x8x8xbf16> to vector<8x8xbf16>
    %c0_5 = arith.constant 0 : index
    %c0_6 = arith.constant 0 : index
    %c0_7 = arith.constant 0 : index
    %c0_8 = arith.constant 0 : index
    %c0_9 = arith.constant 0 : index
    %5 = vector.load %arg4[%c0_5, %c0_6, %c0_7, %c0_8, %c0_9] : memref<1x1x1x8x8xbf16, #tpu.memory_space<vmem>>, vector<1x1x1x8x8xbf16>
    %6 = vector.shape_cast %5 : vector<1x1x1x8x8xbf16> to vector<8x8xbf16>
    %cst = arith.constant dense<0.000000e+00> : vector<8x8xf32>
    %7 = tpu.matmul %4, %6, %cst {dimension_numbers = #tpu.dot_dimension_numbers<[1], [1], [0], [0], [0, 0, 1, 0], [], []>} : vector<8x8xbf16>, vector<8x8xbf16>, vector<8x8xf32> -> vector<8x8xf32>
    %c0_10 = arith.constant 0 : index
    %c0_11 = arith.constant 0 : index
    %c0_12 = arith.constant 0 : index
    %8 = vector.load %arg6[%c0_10, %c0_11, %c0_12] : memref<1x1x8xi32, #tpu.memory_space<vmem>>, vector<1x1x8xi32>
    %9 = vector.shape_cast %8 : vector<1x1x8xi32> to vector<1x8xi32>
    %c0_i32_13 = arith.constant 0 : i32
    %10 = vector.broadcast %c0_i32_13 : i32 to vector<1x8xi32>
    %11 = arith.cmpi ne, %9, %10 : vector<1x8xi32>
    %12 = vector.shape_cast %11 : vector<1x8xi1> to vector<1x8xi1>
    %13 = vector.broadcast %12 : vector<1x8xi1> to vector<8x8xi1>
    %cst_14 = arith.constant -1.000000e+20 : f32
    %14 = vector.broadcast %cst_14 : f32 to vector<8x8xf32>
    %15 = arith.select %13, %7, %14 : vector<8x8xi1>, vector<8x8xf32>
    %cst_15 = arith.constant 0.176776692 : f32
    %16 = vector.broadcast %cst_15 : f32 to vector<8x8xf32>
    %17 = arith.mulf %15, %16 : vector<8x8xf32>
    %c0_16 = arith.constant 0 : index
    %c0_17 = arith.constant 0 : index
    %18 = vector.load %arg8[%c0_16, %c0_17] : memref<8x1xf32, #tpu.memory_space<vmem>>, vector<8x1xf32>
    %cst_18 = arith.constant dense<0xFF800000> : vector<8xf32>
    %19 = vector.multi_reduction <maximumf>, %17, %cst_18 [1] : vector<8x8xf32> to vector<8xf32>
    %20 = vector.shape_cast %19 : vector<8xf32> to vector<8x1xf32>
    %21 = arith.maximumf %18, %20 : vector<8x1xf32>
    %22 = arith.subf %18, %21 : vector<8x1xf32>
    %23 = math.exp %22 : vector<8x1xf32>
    %24 = vector.broadcast %21 : vector<8x1xf32> to vector<8x8xf32>
    %25 = arith.subf %17, %24 : vector<8x8xf32>
    %26 = math.exp %25 : vector<8x8xf32>
    %c0_19 = arith.constant 0 : index
    %c0_20 = arith.constant 0 : index
    %27 = vector.load %arg9[%c0_19, %c0_20] : memref<8x1xf32, #tpu.memory_space<vmem>>, vector<8x1xf32>
    %28 = arith.mulf %23, %27 : vector<8x1xf32>
    %cst_21 = arith.constant dense<0.000000e+00> : vector<8xf32>
    %29 = vector.multi_reduction <add>, %26, %cst_21 [1] : vector<8x8xf32> to vector<8xf32>
    %30 = vector.shape_cast %29 : vector<8xf32> to vector<8x1xf32>
    %31 = arith.addf %28, %30 : vector<8x1xf32>
    %c0_22 = arith.constant 0 : index
    %c0_23 = arith.constant 0 : index
    %32 = vector.load %arg9[%c0_22, %c0_23] : memref<8x1xf32, #tpu.memory_space<vmem>>, vector<8x1xf32>
    tpu.vector_store %arg9[%c0_22, %c0_23], %31 {strides = array<i32>} : memref<8x1xf32, #tpu.memory_space<vmem>>, vector<8x1xf32>,
    %c0_24 = arith.constant 0 : index
    %c0_25 = arith.constant 0 : index
    %33 = vector.load %arg10[%c0_24, %c0_25] : memref<8x8xf32, #tpu.memory_space<vmem>>, vector<8x8xf32>
    %34 = vector.broadcast %23 : vector<8x1xf32> to vector<8x8xf32>
    %35 = arith.mulf %34, %33 : vector<8x8xf32>
    %36 = arith.truncf %26 : vector<8x8xf32> to vector<8x8xbf16>
    %c0_26 = arith.constant 0 : index
    %c0_27 = arith.constant 0 : index
    %c0_28 = arith.constant 0 : index
    %c0_29 = arith.constant 0 : index
    %c0_30 = arith.constant 0 : index
    %37 = vector.load %arg5[%c0_26, %c0_27, %c0_28, %c0_29, %c0_30] : memref<1x1x1x8x8xbf16, #tpu.memory_space<vmem>>, vector<1x1x1x8x8xbf16>
    %38 = vector.shape_cast %37 : vector<1x1x1x8x8xbf16> to vector<8x8xbf16>
    %cst_31 = arith.constant dense<0.000000e+00> : vector<8x8xf32>
    %39 = tpu.matmul %36, %38, %cst_31 {dimension_numbers = #tpu.dot_dimension_numbers<[1], [0], [0], [1], [0, 0, 1, 1], [], []>} : vector<8x8xbf16>, vector<8x8xbf16>, vector<8x8xf32> -> vector<8x8xf32>
    %40 = arith.addf %35, %39 : vector<8x8xf32>
    %c0_32 = arith.constant 0 : index
    %c0_33 = arith.constant 0 : index
    %41 = vector.load %arg10[%c0_32, %c0_33] : memref<8x8xf32, #tpu.memory_space<vmem>>, vector<8x8xf32>
    tpu.vector_store %arg10[%c0_32, %c0_33], %40 {strides = array<i32>} : memref<8x8xf32, #tpu.memory_space<vmem>>, vector<8x8xf32>,
    %c0_34 = arith.constant 0 : index
    %c0_35 = arith.constant 0 : index
    %42 = vector.load %arg8[%c0_34, %c0_35] : memref<8x1xf32, #tpu.memory_space<vmem>>, vector<8x1xf32>
    tpu.vector_store %arg8[%c0_34, %c0_35], %21 {strides = array<i32>} : memref<8x1xf32, #tpu.memory_space<vmem>>, vector<8x1xf32>,
    %c0_i32_36 = arith.constant 0 : i32
    %43 = arith.cmpi eq, %arg2, %c0_i32_36 : i32
    %44 = arith.extui %43 : i1 to i32
    %c0_i32_37 = arith.constant 0 : i32
    %45 = arith.cmpi ne, %44, %c0_i32_37 : i32
    scf.if %45 {
      %c0_38 = arith.constant 0 : index
      %c0_39 = arith.constant 0 : index
      %46 = vector.load %arg10[%c0_38, %c0_39] : memref<8x8xf32, #tpu.memory_space<vmem>>, vector<8x8xf32>
      %c0_40 = arith.constant 0 : index
      %c0_41 = arith.constant 0 : index
      %47 = vector.load %arg9[%c0_40, %c0_41] : memref<8x1xf32, #tpu.memory_space<vmem>>, vector<8x1xf32>
      %48 = tpu.reciprocal %47 {approx = true} : vector<8x1xf32> -> vector<8x1xf32>
      %49 = vector.broadcast %48 : vector<8x1xf32> to vector<8x8xf32>
      %50 = arith.mulf %46, %49 : vector<8x8xf32>
      %51 = arith.truncf %50 : vector<8x8xf32> to vector<8x8xbf16>
      %c0_42 = arith.constant 0 : index
      %c0_43 = arith.constant 0 : index
      %c0_44 = arith.constant 0 : index
      %c0_45 = arith.constant 0 : index
      %52 = vector.load %arg7[%c0_42, %c0_43, %c0_44, %c0_45] : memref<1x1x8x8xbf16, #tpu.memory_space<vmem>>, vector<1x1x8x8xbf16>
      %53 = vector.shape_cast %52 : vector<1x1x8x8xbf16> to vector<8x8xbf16>
      %54 = vector.shape_cast %51 : vector<8x8xbf16> to vector<1x1x8x8xbf16>
      tpu.vector_store %arg7[%c0_42, %c0_43, %c0_44, %c0_45], %54 {strides = array<i32>} : memref<1x1x8x8xbf16, #tpu.memory_space<vmem>>, vector<1x1x8x8xbf16>,
    } else {
    }
    return
  }
  func.func @transform_0(%arg0: i32, %arg1: i32, %arg2: i32) -> (i32, i32, i32, i32, i32) {
    %c0_i32 = arith.constant 0 : i32
    %c0_i32_0 = arith.constant 0 : i32
    %c0_i32_1 = arith.constant 0 : i32
    %c0_i32_2 = arith.constant 0 : i32
    return %arg0, %c0_i32, %arg1, %c0_i32_0, %c0_i32_1 : i32, i32, i32, i32, i32
  }
  func.func @transform_1(%arg0: i32, %arg1: i32, %arg2: i32) -> (i32, i32, i32, i32, i32) {
    %c1_i32 = arith.constant 1 : i32
    %c0_i32 = arith.constant 0 : i32
    %c0_i32_0 = arith.constant 0 : i32
    return %arg0, %c1_i32, %arg1, %arg2, %c0_i32 : i32, i32, i32, i32, i32
  }
  func.func @transform_2(%arg0: i32, %arg1: i32, %arg2: i32) -> (i32, i32, i32, i32, i32) {
    %c2_i32 = arith.constant 2 : i32
    %c0_i32 = arith.constant 0 : i32
    %c0_i32_0 = arith.constant 0 : i32
    return %arg0, %c2_i32, %arg1, %arg2, %c0_i32 : i32, i32, i32, i32, i32
  }
  func.func @transform_3(%arg0: i32, %arg1: i32, %arg2: i32) -> (i32, i32, i32) {
    %c0_i32 = arith.constant 0 : i32
    %c0_i32_0 = arith.constant 0 : i32
    return %arg0, %c0_i32, %arg2 : i32, i32, i32
  }
  func.func @transform_4(%arg0: i32, %arg1: i32, %arg2: i32) -> (i32, i32, i32, i32) {
    %c0_i32 = arith.constant 0 : i32
    %c0_i32_0 = arith.constant 0 : i32
    %c0_i32_1 = arith.constant 0 : i32
    return %arg0, %arg1, %c0_i32, %c0_i32_0 : i32, i32, i32, i32
  }
}

module attributes {stable_mosaic.version = 11 : i64} {
  func.func @_ffn_res_ln_kernel(%arg0: i32, %arg1: i32, %arg2: memref<16x32xbf16, #tpu.memory_space<vmem>>, %arg3: memref<32x128xbf16, #tpu.memory_space<vmem>>, %arg4: memref<1x128xf32, #tpu.memory_space<vmem>>, %arg5: memref<128x32xbf16, #tpu.memory_space<vmem>>, %arg6: memref<1x32xf32, #tpu.memory_space<vmem>>, %arg7: memref<16x32xbf16, #tpu.memory_space<vmem>>, %arg8: memref<1x32xf32, #tpu.memory_space<vmem>>, %arg9: memref<1x32xf32, #tpu.memory_space<vmem>>, %arg10: memref<16x32xbf16, #tpu.memory_space<vmem>>, %arg11: memref<16x128xf32, #tpu.memory_space<vmem>>) attributes {dimension_semantics = [#tpu.dimension_semantics<parallel>, #tpu.dimension_semantics<arbitrary>], iteration_bounds = array<i64: 1, 1>, scalar_prefetch = 0 : i64, scratch_operands = 1 : i64, tpu.core_type = #tpu.core_type<tc>, window_params = [{transform_indices = @transform_0, window_bounds = array<i64: 16, 32>}, {transform_indices = @transform_1, window_bounds = array<i64: 32, 128>}, {pipeline_mode = #tpu.pipeline_mode<synchronous>, transform_indices = @transform_2, window_bounds = array<i64: 1, 128>}, {pipeline_mode = #tpu.pipeline_mode<synchronous>, transform_indices = @transform_3, window_bounds = array<i64: 128, 32>}, {pipeline_mode = #tpu.pipeline_mode<synchronous>, transform_indices = @transform_4, window_bounds = array<i64: 1, 32>}, {transform_indices = @transform_5, window_bounds = array<i64: 16, 32>}, {pipeline_mode = #tpu.pipeline_mode<synchronous>, transform_indices = @transform_6, window_bounds = array<i64: 1, 32>}, {pipeline_mode = #tpu.pipeline_mode<synchronous>, transform_indices = @transform_7, window_bounds = array<i64: 1, 32>}, {transform_indices = @transform_8, window_bounds = array<i64: 16, 32>}]} {
    %c0_i32 = arith.constant 0 : i32
    %0 = arith.cmpi eq, %arg1, %c0_i32 : i32
    %1 = arith.extui %0 : i1 to i32
    %c0_i32_0 = arith.constant 0 : i32
    %2 = arith.cmpi ne, %1, %c0_i32_0 : i32
    scf.if %2 {
      %cst_10 = arith.constant 0.000000e+00 : f32
      %12 = vector.broadcast %cst_10 : f32 to vector<16x128xf32>
      %c0_11 = arith.constant 0 : index
      %c0_12 = arith.constant 0 : index
      %13 = vector.load %arg11[%c0_11, %c0_12] : memref<16x128xf32, #tpu.memory_space<vmem>>, vector<16x128xf32>
      tpu.vector_store %arg11[%c0_11, %c0_12], %12 {strides = array<i32>} : memref<16x128xf32, #tpu.memory_space<vmem>>, vector<16x128xf32>,
    } else {
    }
    %c0 = arith.constant 0 : index
    %c0_1 = arith.constant 0 : index
    %3 = vector.load %arg11[%c0, %c0_1] : memref<16x128xf32, #tpu.memory_space<vmem>>, vector<16x128xf32>
    %c0_2 = arith.constant 0 : index
    %c0_3 = arith.constant 0 : index
    %4 = vector.load %arg2[%c0_2, %c0_3] : memref<16x32xbf16, #tpu.memory_space<vmem>>, vector<16x32xbf16>
    %c0_4 = arith.constant 0 : index
    %c0_5 = arith.constant 0 : index
    %5 = vector.load %arg3[%c0_4, %c0_5] : memref<32x128xbf16, #tpu.memory_space<vmem>>, vector<32x128xbf16>
    %cst = arith.constant dense<0.000000e+00> : vector<16x128xf32>
    %6 = tpu.matmul %4, %5, %cst {dimension_numbers = #tpu.dot_dimension_numbers<[1], [0], [0], [1], [0, 0, 1, 1], [], []>} : vector<16x32xbf16>, vector<32x128xbf16>, vector<16x128xf32> -> vector<16x128xf32>
    %7 = arith.addf %3, %6 : vector<16x128xf32>
    %c0_6 = arith.constant 0 : index
    %c0_7 = arith.constant 0 : index
    %8 = vector.load %arg11[%c0_6, %c0_7] : memref<16x128xf32, #tpu.memory_space<vmem>>, vector<16x128xf32>
    tpu.vector_store %arg11[%c0_6, %c0_7], %7 {strides = array<i32>} : memref<16x128xf32, #tpu.memory_space<vmem>>, vector<16x128xf32>,
    %c0_i32_8 = arith.constant 0 : i32
    %9 = arith.cmpi eq, %arg1, %c0_i32_8 : i32
    %10 = arith.extui %9 : i1 to i32
    %c0_i32_9 = arith.constant 0 : i32
    %11 = arith.cmpi ne, %10, %c0_i32_9 : i32
    scf.if %11 {
      %c0_10 = arith.constant 0 : index
      %c0_11 = arith.constant 0 : index
      %12 = vector.load %arg11[%c0_10, %c0_11] : memref<16x128xf32, #tpu.memory_space<vmem>>, vector<16x128xf32>
      %c0_12 = arith.constant 0 : index
      %c0_13 = arith.constant 0 : index
      %13 = vector.load %arg4[%c0_12, %c0_13] : memref<1x128xf32, #tpu.memory_space<vmem>>, vector<1x128xf32>
      %14 = vector.broadcast %13 : vector<1x128xf32> to vector<16x128xf32>
      %15 = arith.addf %12, %14 : vector<16x128xf32>
      %cst_14 = arith.constant 0.000000e+00 : f32
      %16 = vector.broadcast %cst_14 : f32 to vector<16x128xf32>
      %17 = arith.maximumf %15, %16 : vector<16x128xf32>
      %18 = arith.truncf %17 : vector<16x128xf32> to vector<16x128xbf16>
      %c0_15 = arith.constant 0 : index
      %c0_16 = arith.constant 0 : index
      %19 = vector.load %arg5[%c0_15, %c0_16] : memref<128x32xbf16, #tpu.memory_space<vmem>>, vector<128x32xbf16>
      %cst_17 = arith.constant dense<0.000000e+00> : vector<16x32xf32>
      %20 = tpu.matmul %18, %19, %cst_17 {dimension_numbers = #tpu.dot_dimension_numbers<[1], [0], [0], [1], [0, 0, 1, 1], [], []>} : vector<16x128xbf16>, vector<128x32xbf16>, vector<16x32xf32> -> vector<16x32xf32>
      %c0_18 = arith.constant 0 : index
      %c0_19 = arith.constant 0 : index
      %21 = vector.load %arg6[%c0_18, %c0_19] : memref<1x32xf32, #tpu.memory_space<vmem>>, vector<1x32xf32>
      %22 = vector.broadcast %21 : vector<1x32xf32> to vector<16x32xf32>
      %23 = arith.addf %20, %22 : vector<16x32xf32>
      %c0_20 = arith.constant 0 : index
      %c0_21 = arith.constant 0 : index
      %24 = vector.load %arg7[%c0_20, %c0_21] : memref<16x32xbf16, #tpu.memory_space<vmem>>, vector<16x32xbf16>
      %25 = arith.extf %24 : vector<16x32xbf16> to vector<16x32xf32>
      %26 = arith.addf %23, %25 : vector<16x32xf32>
      %cst_22 = arith.constant dense<0.000000e+00> : vector<16xf32>
      %27 = vector.multi_reduction <add>, %26, %cst_22 [1] : vector<16x32xf32> to vector<16xf32>
      %28 = vector.shape_cast %27 : vector<16xf32> to vector<16x1xf32>
      %cst_23 = arith.constant 3.200000e+01 : f32
      %29 = vector.broadcast %cst_23 : f32 to vector<16x1xf32>
      %30 = arith.divf %28, %29 : vector<16x1xf32>
      %31 = vector.broadcast %30 : vector<16x1xf32> to vector<16x32xf32>
      %32 = arith.subf %26, %31 : vector<16x32xf32>
      %33 = arith.mulf %32, %32 : vector<16x32xf32>
      %cst_24 = arith.constant dense<0.000000e+00> : vector<16xf32>
      %34 = vector.multi_reduction <add>, %33, %cst_24 [1] : vector<16x32xf32> to vector<16xf32>
      %35 = vector.shape_cast %34 : vector<16xf32> to vector<16x1xf32>
      %cst_25 = arith.constant 3.200000e+01 : f32
      %36 = vector.broadcast %cst_25 : f32 to vector<16x1xf32>
      %37 = arith.divf %35, %36 : vector<16x1xf32>
      %38 = vector.broadcast %30 : vector<16x1xf32> to vector<16x32xf32>
      %39 = arith.subf %26, %38 : vector<16x32xf32>
      %cst_26 = arith.constant 9.99999974E-6 : f32
      %40 = vector.broadcast %cst_26 : f32 to vector<16x1xf32>
      %41 = arith.addf %37, %40 : vector<16x1xf32>
      %42 = math.rsqrt %41 : vector<16x1xf32>
      %43 = vector.broadcast %42 : vector<16x1xf32> to vector<16x32xf32>
      %44 = arith.mulf %39, %43 : vector<16x32xf32>
      %c0_27 = arith.constant 0 : index
      %c0_28 = arith.constant 0 : index
      %45 = vector.load %arg8[%c0_27, %c0_28] : memref<1x32xf32, #tpu.memory_space<vmem>>, vector<1x32xf32>
      %46 = vector.broadcast %45 : vector<1x32xf32> to vector<16x32xf32>
      %47 = arith.mulf %44, %46 : vector<16x32xf32>
      %c0_29 = arith.constant 0 : index
      %c0_30 = arith.constant 0 : index
      %48 = vector.load %arg9[%c0_29, %c0_30] : memref<1x32xf32, #tpu.memory_space<vmem>>, vector<1x32xf32>
      %49 = vector.broadcast %48 : vector<1x32xf32> to vector<16x32xf32>
      %50 = arith.addf %47, %49 : vector<16x32xf32>
      %51 = arith.truncf %50 : vector<16x32xf32> to vector<16x32xbf16>
      %c0_31 = arith.constant 0 : index
      %c0_32 = arith.constant 0 : index
      %52 = vector.load %arg10[%c0_31, %c0_32] : memref<16x32xbf16, #tpu.memory_space<vmem>>, vector<16x32xbf16>
      tpu.vector_store %arg10[%c0_31, %c0_32], %51 {strides = array<i32>} : memref<16x32xbf16, #tpu.memory_space<vmem>>, vector<16x32xbf16>,
    } else {
    }
    return
  }
  func.func @transform_0(%arg0: i32, %arg1: i32) -> (i32, i32) {
    %c0_i32 = arith.constant 0 : i32
    return %arg0, %arg1 : i32, i32
  }
  func.func @transform_1(%arg0: i32, %arg1: i32) -> (i32, i32) {
    %c0_i32 = arith.constant 0 : i32
    %c0_i32_0 = arith.constant 0 : i32
    return %arg1, %c0_i32 : i32, i32
  }
  func.func @transform_2(%arg0: i32, %arg1: i32) -> (i32, i32) {
    %c0_i32 = arith.constant 0 : i32
    %c0_i32_0 = arith.constant 0 : i32
    %c0_i32_1 = arith.constant 0 : i32
    return %c0_i32, %c0_i32_0 : i32, i32
  }
  func.func @transform_3(%arg0: i32, %arg1: i32) -> (i32, i32) {
    %c0_i32 = arith.constant 0 : i32
    %c0_i32_0 = arith.constant 0 : i32
    %c0_i32_1 = arith.constant 0 : i32
    return %c0_i32, %c0_i32_0 : i32, i32
  }
  func.func @transform_4(%arg0: i32, %arg1: i32) -> (i32, i32) {
    %c0_i32 = arith.constant 0 : i32
    %c0_i32_0 = arith.constant 0 : i32
    %c0_i32_1 = arith.constant 0 : i32
    return %c0_i32, %c0_i32_0 : i32, i32
  }
  func.func @transform_5(%arg0: i32, %arg1: i32) -> (i32, i32) {
    %c0_i32 = arith.constant 0 : i32
    %c0_i32_0 = arith.constant 0 : i32
    return %arg0, %c0_i32 : i32, i32
  }
  func.func @transform_6(%arg0: i32, %arg1: i32) -> (i32, i32) {
    %c0_i32 = arith.constant 0 : i32
    %c0_i32_0 = arith.constant 0 : i32
    %c0_i32_1 = arith.constant 0 : i32
    return %c0_i32, %c0_i32_0 : i32, i32
  }
  func.func @transform_7(%arg0: i32, %arg1: i32) -> (i32, i32) {
    %c0_i32 = arith.constant 0 : i32
    %c0_i32_0 = arith.constant 0 : i32
    %c0_i32_1 = arith.constant 0 : i32
    return %c0_i32, %c0_i32_0 : i32, i32
  }
  func.func @transform_8(%arg0: i32, %arg1: i32) -> (i32, i32) {
    %c0_i32 = arith.constant 0 : i32
    %c0_i32_0 = arith.constant 0 : i32
    return %arg0, %c0_i32 : i32, i32
  }
}

module attributes {stable_mosaic.version = 11 : i64} {
  func.func @_linear_kernel(%arg0: i32, %arg1: i32, %arg2: i32, %arg3: memref<16x32xbf16, #tpu.memory_space<vmem>>, %arg4: memref<32x64xbf16, #tpu.memory_space<vmem>>, %arg5: memref<1x64xf32, #tpu.memory_space<vmem>>, %arg6: memref<16x64xbf16, #tpu.memory_space<vmem>>, %arg7: memref<16x64xf32, #tpu.memory_space<vmem>>) attributes {dimension_semantics = [#tpu.dimension_semantics<parallel>, #tpu.dimension_semantics<parallel>, #tpu.dimension_semantics<arbitrary>], iteration_bounds = array<i64: 1, 1, 1>, scalar_prefetch = 0 : i64, scratch_operands = 1 : i64, tpu.core_type = #tpu.core_type<tc>, window_params = [{transform_indices = @transform_0, window_bounds = array<i64: 16, 32>}, {transform_indices = @transform_1, window_bounds = array<i64: 32, 64>}, {transform_indices = @transform_2, window_bounds = array<i64: 1, 64>}, {transform_indices = @transform_3, window_bounds = array<i64: 16, 64>}]} {
    %c0_i32 = arith.constant 0 : i32
    %0 = arith.cmpi eq, %arg2, %c0_i32 : i32
    %1 = arith.extui %0 : i1 to i32
    %c0_i32_0 = arith.constant 0 : i32
    %2 = arith.cmpi ne, %1, %c0_i32_0 : i32
    scf.if %2 {
      %cst_10 = arith.constant 0.000000e+00 : f32
      %12 = vector.broadcast %cst_10 : f32 to vector<16x64xf32>
      %c0_11 = arith.constant 0 : index
      %c0_12 = arith.constant 0 : index
      %13 = vector.load %arg7[%c0_11, %c0_12] : memref<16x64xf32, #tpu.memory_space<vmem>>, vector<16x64xf32>
      tpu.vector_store %arg7[%c0_11, %c0_12], %12 {strides = array<i32>} : memref<16x64xf32, #tpu.memory_space<vmem>>, vector<16x64xf32>,
    } else {
    }
    %c0 = arith.constant 0 : index
    %c0_1 = arith.constant 0 : index
    %3 = vector.load %arg7[%c0, %c0_1] : memref<16x64xf32, #tpu.memory_space<vmem>>, vector<16x64xf32>
    %c0_2 = arith.constant 0 : index
    %c0_3 = arith.constant 0 : index
    %4 = vector.load %arg3[%c0_2, %c0_3] : memref<16x32xbf16, #tpu.memory_space<vmem>>, vector<16x32xbf16>
    %c0_4 = arith.constant 0 : index
    %c0_5 = arith.constant 0 : index
    %5 = vector.load %arg4[%c0_4, %c0_5] : memref<32x64xbf16, #tpu.memory_space<vmem>>, vector<32x64xbf16>
    %cst = arith.constant dense<0.000000e+00> : vector<16x64xf32>
    %6 = tpu.matmul %4, %5, %cst {dimension_numbers = #tpu.dot_dimension_numbers<[1], [0], [0], [1], [0, 0, 1, 1], [], []>} : vector<16x32xbf16>, vector<32x64xbf16>, vector<16x64xf32> -> vector<16x64xf32>
    %7 = arith.addf %3, %6 : vector<16x64xf32>
    %c0_6 = arith.constant 0 : index
    %c0_7 = arith.constant 0 : index
    %8 = vector.load %arg7[%c0_6, %c0_7] : memref<16x64xf32, #tpu.memory_space<vmem>>, vector<16x64xf32>
    tpu.vector_store %arg7[%c0_6, %c0_7], %7 {strides = array<i32>} : memref<16x64xf32, #tpu.memory_space<vmem>>, vector<16x64xf32>,
    %c0_i32_8 = arith.constant 0 : i32
    %9 = arith.cmpi eq, %arg2, %c0_i32_8 : i32
    %10 = arith.extui %9 : i1 to i32
    %c0_i32_9 = arith.constant 0 : i32
    %11 = arith.cmpi ne, %10, %c0_i32_9 : i32
    scf.if %11 {
      %c0_10 = arith.constant 0 : index
      %c0_11 = arith.constant 0 : index
      %12 = vector.load %arg7[%c0_10, %c0_11] : memref<16x64xf32, #tpu.memory_space<vmem>>, vector<16x64xf32>
      %c0_12 = arith.constant 0 : index
      %c0_13 = arith.constant 0 : index
      %13 = vector.load %arg5[%c0_12, %c0_13] : memref<1x64xf32, #tpu.memory_space<vmem>>, vector<1x64xf32>
      %14 = vector.broadcast %13 : vector<1x64xf32> to vector<16x64xf32>
      %15 = arith.addf %12, %14 : vector<16x64xf32>
      %16 = arith.truncf %15 : vector<16x64xf32> to vector<16x64xbf16>
      %c0_14 = arith.constant 0 : index
      %c0_15 = arith.constant 0 : index
      %17 = vector.load %arg6[%c0_14, %c0_15] : memref<16x64xbf16, #tpu.memory_space<vmem>>, vector<16x64xbf16>
      tpu.vector_store %arg6[%c0_14, %c0_15], %16 {strides = array<i32>} : memref<16x64xbf16, #tpu.memory_space<vmem>>, vector<16x64xbf16>,
    } else {
    }
    return
  }
  func.func @transform_0(%arg0: i32, %arg1: i32, %arg2: i32) -> (i32, i32) {
    %c0_i32 = arith.constant 0 : i32
    return %arg0, %arg2 : i32, i32
  }
  func.func @transform_1(%arg0: i32, %arg1: i32, %arg2: i32) -> (i32, i32) {
    %c0_i32 = arith.constant 0 : i32
    return %arg2, %arg1 : i32, i32
  }
  func.func @transform_2(%arg0: i32, %arg1: i32, %arg2: i32) -> (i32, i32) {
    %c0_i32 = arith.constant 0 : i32
    %c0_i32_0 = arith.constant 0 : i32
    return %c0_i32, %arg1 : i32, i32
  }
  func.func @transform_3(%arg0: i32, %arg1: i32, %arg2: i32) -> (i32, i32) {
    %c0_i32 = arith.constant 0 : i32
    return %arg0, %arg1 : i32, i32
  }
}

module attributes {stable_mosaic.version = 11 : i64} {
  func.func @_flash_attn_kernel(%arg0: i32, %arg1: i32, %arg2: i32, %arg3: memref<1x1x1x8x8xbf16, #tpu.memory_space<vmem>>, %arg4: memref<1x1x1x8x8xbf16, #tpu.memory_space<vmem>>, %arg5: memref<1x1x1x8x8xbf16, #tpu.memory_space<vmem>>, %arg6: memref<1x1x8xi32, #tpu.memory_space<vmem>>, %arg7: memref<1x1x8x8xbf16, #tpu.memory_space<vmem>>, %arg8: memref<8x1xf32, #tpu.memory_space<vmem>>, %arg9: memref<8x1xf32, #tpu.memory_space<vmem>>, %arg10: memref<8x8xf32, #tpu.memory_space<vmem>>) attributes {dimension_semantics = [#tpu.dimension_semantics<parallel>, #tpu.dimension_semantics<parallel>, #tpu.dimension_semantics<arbitrary>], iteration_bounds = array<i64: 2, 4, 1>, scalar_prefetch = 0 : i64, scratch_operands = 3 : i64, tpu.core_type = #tpu.core_type<tc>, window_params = [{transform_indices = @transform_0, window_bounds = array<i64: 1, 1, 1, 8, 8>}, {transform_indices = @transform_1, window_bounds = array<i64: 1, 1, 1, 8, 8>}, {transform_indices = @transform_2, window_bounds = array<i64: 1, 1, 1, 8, 8>}, {transform_indices = @transform_3, window_bounds = array<i64: 1, 1, 8>}, {transform_indices = @transform_4, window_bounds = array<i64: 1, 1, 8, 8>}]} {
    %c0_i32 = arith.constant 0 : i32
    %0 = arith.cmpi eq, %arg2, %c0_i32 : i32
    %1 = arith.extui %0 : i1 to i32
    %c0_i32_0 = arith.constant 0 : i32
    %2 = arith.cmpi ne, %1, %c0_i32_0 : i32
    scf.if %2 {
      %cst_38 = arith.constant 0xFF800000 : f32
      %46 = vector.broadcast %cst_38 : f32 to vector<8x1xf32>
      %c0_39 = arith.constant 0 : index
      %c0_40 = arith.constant 0 : index
      %47 = vector.load %arg8[%c0_39, %c0_40] : memref<8x1xf32, #tpu.memory_space<vmem>>, vector<8x1xf32>
      tpu.vector_store %arg8[%c0_39, %c0_40], %46 {strides = array<i32>} : memref<8x1xf32, #tpu.memory_space<vmem>>, vector<8x1xf32>,
      %cst_41 = arith.constant 0.000000e+00 : f32
      %48 = vector.broadcast %cst_41 : f32 to vector<8x1xf32>
      %c0_42 = arith.constant 0 : index
      %c0_43 = arith.constant 0 : index
      %49 = vector.load %arg9[%c0_42, %c0_43] : memref<8x1xf32, #tpu.memory_space<vmem>>, vector<8x1xf32>
      tpu.vector_store %arg9[%c0_42, %c0_43], %48 {strides = array<i32>} : memref<8x1xf32, #tpu.memory_space<vmem>>, vector<8x1xf32>,
      %cst_44 = arith.constant 0.000000e+00 : f32
      %50 = vector.broadcast %cst_44 : f32 to vector<8x8xf32>
      %c0_45 = arith.constant 0 : index
      %c0_46 = arith.constant 0 : index
      %51 = vector.load %arg10[%c0_45, %c0_46] : memref<8x8xf32, #tpu.memory_space<vmem>>, vector<8x8xf32>
      tpu.vector_store %arg10[%c0_45, %c0_46], %50 {strides = array<i32>} : memref<8x8xf32, #tpu.memory_space<vmem>>, vector<8x8xf32>,
    } else {
    }
    %c0 = arith.constant 0 : index
    %c0_1 = arith.constant 0 : index
    %c0_2 = arith.constant 0 : index
    %c0_3 = arith.constant 0 : index
    %c0_4 = arith.constant 0 : index
    %3 = vector.load %arg3[%c0, %c0_1, %c0_2, %c0_3, %c0_4] : memref<1x1x1x8x8xbf16, #tpu.memory_space<vmem>>, vector<1x1x1x8x8xbf16>
    %4 = vector.shape_cast %3 : vector<1x1x1x8x8xbf16> to vector<8x8xbf16>
    %c0_5 = arith.constant 0 : index
    %c0_6 = arith.constant 0 : index
    %c0_7 = arith.constant 0 : index
    %c0_8 = arith.constant 0 : index
    %c0_9 = arith.constant 0 : index
    %5 = vector.load %arg4[%c0_5, %c0_6, %c0_7, %c0_8, %c0_9] : memref<1x1x1x8x8xbf16, #tpu.memory_space<vmem>>, vector<1x1x1x8x8xbf16>
    %6 = vector.shape_cast %5 : vector<1x1x1x8x8xbf16> to vector<8x8xbf16>
    %cst = arith.constant dense<0.000000e+00> : vector<8x8xf32>
    %7 = tpu.matmul %4, %6, %cst {dimension_numbers = #tpu.dot_dimension_numbers<[1], [1], [0], [0], [0, 0, 1, 0], [], []>} : vector<8x8xbf16>, vector<8x8xbf16>, vector<8x8xf32> -> vector<8x8xf32>
    %c0_10 = arith.constant 0 : index
    %c0_11 = arith.constant 0 : index
    %c0_12 = arith.constant 0 : index
    %8 = vector.load %arg6[%c0_10, %c0_11, %c0_12] : memref<1x1x8xi32, #tpu.memory_space<vmem>>, vector<1x1x8xi32>
    %9 = vector.shape_cast %8 : vector<1x1x8xi32> to vector<1x8xi32>
    %c0_i32_13 = arith.constant 0 : i32
    %10 = vector.broadcast %c0_i32_13 : i32 to vector<1x8xi32>
    %11 = arith.cmpi ne, %9, %10 : vector<1x8xi32>
    %12 = vector.shape_cast %11 : vector<1x8xi1> to vector<1x8xi1>
    %13 = vector.broadcast %12 : vector<1x8xi1> to vector<8x8xi1>
    %cst_14 = arith.constant -1.000000e+20 : f32
    %14 = vector.broadcast %cst_14 : f32 to vector<8x8xf32>
    %15 = arith.select %13, %7, %14 : vector<8x8xi1>, vector<8x8xf32>
    %cst_15 = arith.constant 0.176776692 : f32
    %16 = vector.broadcast %cst_15 : f32 to vector<8x8xf32>
    %17 = arith.mulf %15, %16 : vector<8x8xf32>
    %c0_16 = arith.constant 0 : index
    %c0_17 = arith.constant 0 : index
    %18 = vector.load %arg8[%c0_16, %c0_17] : memref<8x1xf32, #tpu.memory_space<vmem>>, vector<8x1xf32>
    %cst_18 = arith.constant dense<0xFF800000> : vector<8xf32>
    %19 = vector.multi_reduction <maximumf>, %17, %cst_18 [1] : vector<8x8xf32> to vector<8xf32>
    %20 = vector.shape_cast %19 : vector<8xf32> to vector<8x1xf32>
    %21 = arith.maximumf %18, %20 : vector<8x1xf32>
    %22 = arith.subf %18, %21 : vector<8x1xf32>
    %23 = math.exp %22 : vector<8x1xf32>
    %24 = vector.broadcast %21 : vector<8x1xf32> to vector<8x8xf32>
    %25 = arith.subf %17, %24 : vector<8x8xf32>
    %26 = math.exp %25 : vector<8x8xf32>
    %c0_19 = arith.constant 0 : index
    %c0_20 = arith.constant 0 : index
    %27 = vector.load %arg9[%c0_19, %c0_20] : memref<8x1xf32, #tpu.memory_space<vmem>>, vector<8x1xf32>
    %28 = arith.mulf %23, %27 : vector<8x1xf32>
    %cst_21 = arith.constant dense<0.000000e+00> : vector<8xf32>
    %29 = vector.multi_reduction <add>, %26, %cst_21 [1] : vector<8x8xf32> to vector<8xf32>
    %30 = vector.shape_cast %29 : vector<8xf32> to vector<8x1xf32>
    %31 = arith.addf %28, %30 : vector<8x1xf32>
    %c0_22 = arith.constant 0 : index
    %c0_23 = arith.constant 0 : index
    %32 = vector.load %arg9[%c0_22, %c0_23] : memref<8x1xf32, #tpu.memory_space<vmem>>, vector<8x1xf32>
    tpu.vector_store %arg9[%c0_22, %c0_23], %31 {strides = array<i32>} : memref<8x1xf32, #tpu.memory_space<vmem>>, vector<8x1xf32>,
    %c0_24 = arith.constant 0 : index
    %c0_25 = arith.constant 0 : index
    %33 = vector.load %arg10[%c0_24, %c0_25] : memref<8x8xf32, #tpu.memory_space<vmem>>, vector<8x8xf32>
    %34 = vector.broadcast %23 : vector<8x1xf32> to vector<8x8xf32>
    %35 = arith.mulf %34, %33 : vector<8x8xf32>
    %36 = arith.truncf %26 : vector<8x8xf32> to vector<8x8xbf16>
    %c0_26 = arith.constant 0 : index
    %c0_27 = arith.constant 0 : index
    %c0_28 = arith.constant 0 : index
    %c0_29 = arith.constant 0 : index
    %c0_30 = arith.constant 0 : index
    %37 = vector.load %arg5[%c0_26, %c0_27, %c0_28, %c0_29, %c0_30] : memref<1x1x1x8x8xbf16, #tpu.memory_space<vmem>>, vector<1x1x1x8x8xbf16>
    %38 = vector.shape_cast %37 : vector<1x1x1x8x8xbf16> to vector<8x8xbf16>
    %cst_31 = arith.constant dense<0.000000e+00> : vector<8x8xf32>
    %39 = tpu.matmul %36, %38, %cst_31 {dimension_numbers = #tpu.dot_dimension_numbers<[1], [0], [0], [1], [0, 0, 1, 1], [], []>} : vector<8x8xbf16>, vector<8x8xbf16>, vector<8x8xf32> -> vector<8x8xf32>
    %40 = arith.addf %35, %39 : vector<8x8xf32>
    %c0_32 = arith.constant 0 : index
    %c0_33 = arith.constant 0 : index
    %41 = vector.load %arg10[%c0_32, %c0_33] : memref<8x8xf32, #tpu.memory_space<vmem>>, vector<8x8xf32>
    tpu.vector_store %arg10[%c0_32, %c0_33], %40 {strides = array<i32>} : memref<8x8xf32, #tpu.memory_space<vmem>>, vector<8x8xf32>,
    %c0_34 = arith.constant 0 : index
    %c0_35 = arith.constant 0 : index
    %42 = vector.load %arg8[%c0_34, %c0_35] : memref<8x1xf32, #tpu.memory_space<vmem>>, vector<8x1xf32>
    tpu.vector_store %arg8[%c0_34, %c0_35], %21 {strides = array<i32>} : memref<8x1xf32, #tpu.memory_space<vmem>>, vector<8x1xf32>,
    %c0_i32_36 = arith.constant 0 : i32
    %43 = arith.cmpi eq, %arg2, %c0_i32_36 : i32
    %44 = arith.extui %43 : i1 to i32
    %c0_i32_37 = arith.constant 0 : i32
    %45 = arith.cmpi ne, %44, %c0_i32_37 : i32
    scf.if %45 {
      %c0_38 = arith.constant 0 : index
      %c0_39 = arith.constant 0 : index
      %46 = vector.load %arg10[%c0_38, %c0_39] : memref<8x8xf32, #tpu.memory_space<vmem>>, vector<8x8xf32>
      %c0_40 = arith.constant 0 : index
      %c0_41 = arith.constant 0 : index
      %47 = vector.load %arg9[%c0_40, %c0_41] : memref<8x1xf32, #tpu.memory_space<vmem>>, vector<8x1xf32>
      %48 = tpu.reciprocal %47 {approx = true} : vector<8x1xf32> -> vector<8x1xf32>
      %49 = vector.broadcast %48 : vector<8x1xf32> to vector<8x8xf32>
      %50 = arith.mulf %46, %49 : vector<8x8xf32>
      %51 = arith.truncf %50 : vector<8x8xf32> to vector<8x8xbf16>
      %c0_42 = arith.constant 0 : index
      %c0_43 = arith.constant 0 : index
      %c0_44 = arith.constant 0 : index
      %c0_45 = arith.constant 0 : index
      %52 = vector.load %arg7[%c0_42, %c0_43, %c0_44, %c0_45] : memref<1x1x8x8xbf16, #tpu.memory_space<vmem>>, vector<1x1x8x8xbf16>
      %53 = vector.shape_cast %52 : vector<1x1x8x8xbf16> to vector<8x8xbf16>
      %54 = vector.shape_cast %51 : vector<8x8xbf16> to vector<1x1x8x8xbf16>
      tpu.vector_store %arg7[%c0_42, %c0_43, %c0_44, %c0_45], %54 {strides = array<i32>} : memref<1x1x8x8xbf16, #tpu.memory_space<vmem>>, vector<1x1x8x8xbf16>,
    } else {
    }
    return
  }
  func.func @transform_0(%arg0: i32, %arg1: i32, %arg2: i32) -> (i32, i32, i32, i32, i32) {
    %c0_i32 = arith.constant 0 : i32
    %c0_i32_0 = arith.constant 0 : i32
    %c0_i32_1 = arith.constant 0 : i32
    %c0_i32_2 = arith.constant 0 : i32
    return %arg0, %c0_i32, %arg1, %c0_i32_0, %c0_i32_1 : i32, i32, i32, i32, i32
  }
  func.func @transform_1(%arg0: i32, %arg1: i32, %arg2: i32) -> (i32, i32, i32, i32, i32) {
    %c0_i32 = arith.constant 0 : i32
    %c0_i32_0 = arith.constant 0 : i32
    %c0_i32_1 = arith.constant 0 : i32
    return %arg0, %c0_i32, %arg1, %arg2, %c0_i32_0 : i32, i32, i32, i32, i32
  }
  func.func @transform_2(%arg0: i32, %arg1: i32, %arg2: i32) -> (i32, i32, i32, i32, i32) {
    %c1_i32 = arith.constant 1 : i32
    %c0_i32 = arith.constant 0 : i32
    %c0_i32_0 = arith.constant 0 : i32
    return %arg0, %c1_i32, %arg1, %arg2, %c0_i32 : i32, i32, i32, i32, i32
  }
  func.func @transform_3(%arg0: i32, %arg1: i32, %arg2: i32) -> (i32, i32, i32) {
    %c0_i32 = arith.constant 0 : i32
    %c0_i32_0 = arith.constant 0 : i32
    return %arg0, %c0_i32, %arg2 : i32, i32, i32
  }
  func.func @transform_4(%arg0: i32, %arg1: i32, %arg2: i32) -> (i32, i32, i32, i32) {
    %c0_i32 = arith.constant 0 : i32
    %c0_i32_0 = arith.constant 0 : i32
    %c0_i32_1 = arith.constant 0 : i32
    return %arg0, %arg1, %c0_i32, %c0_i32_0 : i32, i32, i32, i32
  }
}

module attributes {stable_mosaic.version = 11 : i64} {
  func.func @_linear_kernel(%arg0: i32, %arg1: i32, %arg2: i32, %arg3: memref<16x32xbf16, #tpu.memory_space<vmem>>, %arg4: memref<32x128xbf16, #tpu.memory_space<vmem>>, %arg5: memref<1x128xf32, #tpu.memory_space<vmem>>, %arg6: memref<16x128xf32, #tpu.memory_space<vmem>>, %arg7: memref<16x128xf32, #tpu.memory_space<vmem>>) attributes {dimension_semantics = [#tpu.dimension_semantics<parallel>, #tpu.dimension_semantics<parallel>, #tpu.dimension_semantics<arbitrary>], iteration_bounds = array<i64: 1, 1, 1>, scalar_prefetch = 0 : i64, scratch_operands = 1 : i64, tpu.core_type = #tpu.core_type<tc>, window_params = [{transform_indices = @transform_0, window_bounds = array<i64: 16, 32>}, {transform_indices = @transform_1, window_bounds = array<i64: 32, 128>}, {transform_indices = @transform_2, window_bounds = array<i64: 1, 128>}, {transform_indices = @transform_3, window_bounds = array<i64: 16, 128>}]} {
    %c0_i32 = arith.constant 0 : i32
    %0 = arith.cmpi eq, %arg2, %c0_i32 : i32
    %1 = arith.extui %0 : i1 to i32
    %c0_i32_0 = arith.constant 0 : i32
    %2 = arith.cmpi ne, %1, %c0_i32_0 : i32
    scf.if %2 {
      %cst_10 = arith.constant 0.000000e+00 : f32
      %12 = vector.broadcast %cst_10 : f32 to vector<16x128xf32>
      %c0_11 = arith.constant 0 : index
      %c0_12 = arith.constant 0 : index
      %13 = vector.load %arg7[%c0_11, %c0_12] : memref<16x128xf32, #tpu.memory_space<vmem>>, vector<16x128xf32>
      tpu.vector_store %arg7[%c0_11, %c0_12], %12 {strides = array<i32>} : memref<16x128xf32, #tpu.memory_space<vmem>>, vector<16x128xf32>,
    } else {
    }
    %c0 = arith.constant 0 : index
    %c0_1 = arith.constant 0 : index
    %3 = vector.load %arg7[%c0, %c0_1] : memref<16x128xf32, #tpu.memory_space<vmem>>, vector<16x128xf32>
    %c0_2 = arith.constant 0 : index
    %c0_3 = arith.constant 0 : index
    %4 = vector.load %arg3[%c0_2, %c0_3] : memref<16x32xbf16, #tpu.memory_space<vmem>>, vector<16x32xbf16>
    %c0_4 = arith.constant 0 : index
    %c0_5 = arith.constant 0 : index
    %5 = vector.load %arg4[%c0_4, %c0_5] : memref<32x128xbf16, #tpu.memory_space<vmem>>, vector<32x128xbf16>
    %cst = arith.constant dense<0.000000e+00> : vector<16x128xf32>
    %6 = tpu.matmul %4, %5, %cst {dimension_numbers = #tpu.dot_dimension_numbers<[1], [0], [0], [1], [0, 0, 1, 1], [], []>} : vector<16x32xbf16>, vector<32x128xbf16>, vector<16x128xf32> -> vector<16x128xf32>
    %7 = arith.addf %3, %6 : vector<16x128xf32>
    %c0_6 = arith.constant 0 : index
    %c0_7 = arith.constant 0 : index
    %8 = vector.load %arg7[%c0_6, %c0_7] : memref<16x128xf32, #tpu.memory_space<vmem>>, vector<16x128xf32>
    tpu.vector_store %arg7[%c0_6, %c0_7], %7 {strides = array<i32>} : memref<16x128xf32, #tpu.memory_space<vmem>>, vector<16x128xf32>,
    %c0_i32_8 = arith.constant 0 : i32
    %9 = arith.cmpi eq, %arg2, %c0_i32_8 : i32
    %10 = arith.extui %9 : i1 to i32
    %c0_i32_9 = arith.constant 0 : i32
    %11 = arith.cmpi ne, %10, %c0_i32_9 : i32
    scf.if %11 {
      %c0_10 = arith.constant 0 : index
      %c0_11 = arith.constant 0 : index
      %12 = vector.load %arg7[%c0_10, %c0_11] : memref<16x128xf32, #tpu.memory_space<vmem>>, vector<16x128xf32>
      %c0_12 = arith.constant 0 : index
      %c0_13 = arith.constant 0 : index
      %13 = vector.load %arg5[%c0_12, %c0_13] : memref<1x128xf32, #tpu.memory_space<vmem>>, vector<1x128xf32>
      %14 = vector.broadcast %13 : vector<1x128xf32> to vector<16x128xf32>
      %15 = arith.addf %12, %14 : vector<16x128xf32>
      %c0_14 = arith.constant 0 : index
      %c0_15 = arith.constant 0 : index
      %16 = vector.load %arg6[%c0_14, %c0_15] : memref<16x128xf32, #tpu.memory_space<vmem>>, vector<16x128xf32>
      tpu.vector_store %arg6[%c0_14, %c0_15], %15 {strides = array<i32>} : memref<16x128xf32, #tpu.memory_space<vmem>>, vector<16x128xf32>,
    } else {
    }
    return
  }
  func.func @transform_0(%arg0: i32, %arg1: i32, %arg2: i32) -> (i32, i32) {
    %c0_i32 = arith.constant 0 : i32
    return %arg0, %arg2 : i32, i32
  }
  func.func @transform_1(%arg0: i32, %arg1: i32, %arg2: i32) -> (i32, i32) {
    %c0_i32 = arith.constant 0 : i32
    return %arg2, %arg1 : i32, i32
  }
  func.func @transform_2(%arg0: i32, %arg1: i32, %arg2: i32) -> (i32, i32) {
    %c0_i32 = arith.constant 0 : i32
    %c0_i32_0 = arith.constant 0 : i32
    return %c0_i32, %arg1 : i32, i32
  }
  func.func @transform_3(%arg0: i32, %arg1: i32, %arg2: i32) -> (i32, i32) {
    %c0_i32 = arith.constant 0 : i32
    return %arg0, %arg1 : i32, i32
  }
}

</mosaic_0001>

<bundles_post_ra>
// kernel: transformer_fwd.35
= control target key start
LH: loop header
LB: loop body
LE: loop exit
PB: predicated region body
PF: predicated region fallthrough
CT: control target
= control target key end

     0   :  { %vm28_vm0 = vcmask 261120   ;;  %v220_v0 = vmov 0.0   ;;  %vm221_vm1 = vmmov 0   ;;  %vm178_vm2 = vcmask 257024   ;;  %s293_s1 = inlined_call_operand.vmem [shape: bf16[32,32], index: 1, kind: input, shape index: {}]   ;;  %s294_s0 = inlined_call_operand.vmem [shape: bf16[16,32], index: 0, kind: input, shape index: {}]   ;;  %s295_s3 = inlined_call_operand.vmem [shape: bf16[16,32], index: 3, kind: input, shape index: {}]   ;;  %s296_s2 = inlined_call_operand.vmem [shape: f32[1,32], index: 2, kind: input, shape index: {}]   ;;  %s297_s4 = inlined_call_operand.vmem [shape: f32[1,32], index: 4, kind: input, shape index: {}]   ;;  %s298_s5 = inlined_call_operand.vmem [shape: f32[1,32], index: 5, kind: input, shape index: {}]   ;;  %s299_s6 = inlined_call_operand.vmem [shape: bf16[16,32], index: 6, kind: output, shape index: {}]  }
   0x1   :  { %203 = vmatprep.subr.bf16.mxu0 %v220_v0  ;;  %v213_v1 = vld [vmem:[%s293_s1 + $0x8] sm:$0xff]   ;;  %207 = vmatprep.mubr.msk.bf16.mxu0 %vm221_vm1, %v220_v0  ;;  %29 = vst.msk [vmem:[#allocation2] sm:$0xff] %vm28_vm0, %v220_v0  ;;  %30 = vst.msk [vmem:[#allocation2 + $0x8] sm:$0xff] %vm28_vm0, %v220_v0  ;;  %v214_v2 = vld [vmem:[%s293_s1] sm:$0xff]  }
   0x2   :  { %204 = vmatpush3.bf16.msra.mxu0 %v213_v1  ;;  %v215_v3 = vld [vmem:[%s294_s0] sm:$0xff]  }
   0x3   :  { %205 = vmatprep.subr.bf16.mxu0 %v220_v0  ;;  %v197_v12 = vld [vmem:[%s295_s3] sm:$0xff]  }
   0x4   :  { %v189_v13 = vld [vmem:[%s296_s2] ss:$0 sm:$0xff]  ;;  %v198_v14 = vunpack.c.l.bf16 %v197_v12  ;;  %v199_v18 = vunpack.c.h.bf16 %v197_v12 }
   0x5   :  { %v190_v41 = vld [vmem:[%s297_s4] ss:$0 sm:$0xff] }
   0x6   :  { %206 = vmatpush3.bf16.msra.mxu0 %v214_v2  ;;  %v191_v43 = vld [vmem:[%s298_s5] ss:$0 sm:$0xff] }
   0x8   :  { %v31_v4 = vld [vmem:[#allocation2] sm:$0xff]  ;;  %v32_v8 = vld [vmem:[#allocation2 + $0x8] sm:$0xff] }
   0x9   :  { %208 = vmatmul.mubr.msk.bf16.vlgmr.msra.gmra.mxu0 %vm28_vm0, %v215_v3 }
  0xc9   :  { %v94_v5 = vpop.f32.mrf.mxu0 }
  0xca   :  { %v101_v6 = vadd.f32 %v94_v5, %v31_v4 }
  0xcb   :  { %v209_v7 = vpop.f32.mrf.mxu0 }
  0xcc   :  { %103 = vst.msk [vmem:[#allocation2] sm:$0xff] %vm28_vm0, %v101_v6 }
  0xcd   :  { %v97_v9 = vpop.f32.mrf.mxu0 }
  0xce   :  { %v102_v10 = vadd.f32 %v97_v9, %v32_v8 }
  0xcf   :  { %v210_v11 = vpop.f32.mrf.mxu0 }
  0xd0   :  { %104 = vst.msk [vmem:[#allocation2 + $0x8] sm:$0xff] %vm28_vm0, %v102_v10 }
  0xd3   :  { %v108_v15 = vld [vmem:[#allocation2] sm:$0xff] }
  0xd4   :  { %v117_v16 = vadd.f32 %v189_v13, %v108_v15 }
  0xd6   :  { %v123_v17 = vadd.f32 %v198_v14, %v117_v16 }
  0xd7   :  { %v109_v19 = vld [vmem:[#allocation2 + $0x8] sm:$0xff] }
  0xd8   :  { %v125_v20 = vsel %vm28_vm0, %v123_v17, 0.0  ;;  %v118_v21 = vadd.f32 %v189_v13, %v109_v19 }
  0xd9   :  { %126 = vadd.xlane.f32.xlu0 %v125_v20 }
  0xda   :  { %v124_v22 = vadd.f32 %v199_v18, %v118_v21 }
  0xdc   :  { %v128_v23 = vsel %vm28_vm0, %v124_v22, 0.0 }
  0xdd   :  { %129 = vadd.xlane.f32.xlu0 %v128_v23 }
 0x162   :  { %v127_v24 = vpop.xlane.xlu0 %126 }
 0x163   :  { %v132_v25 = vmul.f32 0.03125, %v127_v24 }
 0x165   :  { %v134_v26 = vsub.f32 %v123_v17, %v132_v25 }
 0x166   :  { %v130_v27 = vpop.xlane.xlu0 %129 }
 0x167   :  { %v133_v28 = vmul.f32 0.03125, %v130_v27  ;;  %v136_v29 = vmul.f32 %v134_v26, %v134_v26 }
 0x169   :  { %v135_v30 = vsub.f32 %v124_v22, %v133_v28  ;;  %v138_v31 = vsel %vm28_vm0, %v136_v29, 0.0 }
 0x16a   :  { %139 = vadd.xlane.f32.xlu1 %v138_v31 }
 0x16b   :  { %v137_v32 = vmul.f32 %v135_v30, %v135_v30 }
 0x16d   :  { %v141_v33 = vsel %vm28_vm0, %v137_v32, 0.0 }
 0x16e   :  { %142 = vadd.xlane.f32.xlu1 %v141_v33 }
 0x1f3   :  { %v140_v34 = vpop.xlane.xlu1 %139 }
 0x1f4   :  { %v144_v35 = vmul.f32 0.03125, %v140_v34 }
 0x1f6   :  { %v146_v36 = vadd.f32 1e-05, %v144_v35 }
 0x1f7   :  { %v143_v37 = vpop.xlane.xlu1 %142 }
 0x1f8   :  { %216 = vrsqrt.f32 %v146_v36  ;;  %v145_v38 = vmul.f32 0.03125, %v143_v37 }
 0x1fa   :  { %v147_v39 = vadd.f32 1e-05, %v145_v38 }
 0x1fc   :  { %218 = vrsqrt.f32 %v147_v39 }
 0x205   :  { %v217_v40 = vpop.eup %216 }
 0x206   :  { %v150_v42 = vmul.f32 %v217_v40, %v134_v26 }
 0x208   :  { %v159_v44 = vmul.f32 %v190_v41, %v150_v42 }
 0x209   :  { %v219_v45 = vpop.eup %218 }
 0x20a   :  { %v168_v46 = vadd.f32 %v191_v43, %v159_v44  ;;  %v151_v47 = vmul.f32 %v219_v45, %v135_v30 }
 0x20c   :  { %v194_v48 = vpack.c.bf16 %v168_v46, %v168_v46  ;;  %v160_v49 = vmul.f32 %v190_v41, %v151_v47 }
 0x20e   :  { %179 = vst.msk [vmem:[%s299_s6] sm:$0xf] %vm178_vm2, %v194_v48  ;;  %v169_v50 = vadd.f32 %v191_v43, %v160_v49 }
 0x210   :  { %v195_v51 = vpack.c.bf16 %v169_v50, %v169_v50 }
 0x212   :  { %180 = vst.msk [vmem:[%s299_s6 + $0x4] sm:$0xf] %vm178_vm2, %v195_v51 }

// kernel: transformer_fwd.33
= control target key start
LH: loop header
LB: loop body
LE: loop exit
PB: predicated region body
PF: predicated region fallthrough
CT: control target
= control target key end

     0   :  { %vm19_vm0 = vcmask 785408   ;;  %v151_v0 = vmov 0.0   ;;  %vm152_vm1 = vmmov 0   ;;  %vm47_vm2 = vcmask 261120   ;;  %s195_s1 = inlined_call_operand.vmem [shape: bf16[32,96], index: 1, kind: input, shape index: {}]   ;;  %s196_s0 = inlined_call_operand.vmem [shape: bf16[16,32], index: 0, kind: input, shape index: {}]   ;;  %s197_s2 = inlined_call_operand.vmem [shape: f32[1,96], index: 2, kind: input, shape index: {}]   ;;  %s198_s3 = inlined_call_operand.vmem [shape: bf16[16,96], index: 3, kind: output, shape index: {}]  }
   0x1   :  { %138 = vmatprep.subr.bf16.mxu0 %v151_v0  ;;  %v148_v1 = vld [vmem:[%s195_s1 + $0x8] sm:$0xff]   ;;  %142 = vmatprep.mubr.msk.bf16.mxu0 %vm152_vm1, %v151_v0  ;;  %20 = vst.msk [vmem:[#allocation2] sm:$0xff] %vm19_vm0, %v151_v0  ;;  %21 = vst.msk [vmem:[#allocation2 + $0x8] sm:$0xff] %vm19_vm0, %v151_v0  ;;  %v149_v2 = vld [vmem:[%s195_s1] sm:$0xff]   ;;  %vm119_vm3 = vcmask 781312  }
   0x2   :  { %139 = vmatpush3.bf16.msra.mxu0 %v148_v1  ;;  %v150_v3 = vld [vmem:[%s196_s0] sm:$0xff]  }
   0x3   :  { %140 = vmatprep.subr.bf16.mxu0 %v151_v0  ;;  %v130_v12 = vld [vmem:[%s197_s2] ss:$0 sm:$0xff] }
   0x6   :  { %141 = vmatpush3.bf16.msra.mxu0 %v149_v2 }
   0x8   :  { %v22_v4 = vld [vmem:[#allocation2] sm:$0xff]  ;;  %v23_v8 = vld [vmem:[#allocation2 + $0x8] sm:$0xff] }
   0x9   :  { %143 = vmatmul.mubr.msk.bf16.vlgmr.msra.gmra.mxu0 %vm47_vm2, %v150_v3 }
  0xc9   :  { %v85_v5 = vpop.f32.mrf.mxu0 }
  0xca   :  { %v92_v6 = vadd.f32 %v85_v5, %v22_v4 }
  0xcb   :  { %v144_v7 = vpop.f32.mrf.mxu0 }
  0xcc   :  { %95 = vst.msk [vmem:[#allocation2] sm:$0xff] %vm19_vm0, %v92_v6 }
  0xcd   :  { %v88_v9 = vpop.f32.mrf.mxu0 }
  0xce   :  { %v93_v10 = vadd.f32 %v88_v9, %v23_v8 }
  0xcf   :  { %v145_v11 = vpop.f32.mrf.mxu0 }
  0xd0   :  { %96 = vst.msk [vmem:[#allocation2 + $0x8] sm:$0xff] %vm19_vm0, %v93_v10 }
  0xd3   :  { %v100_v13 = vld [vmem:[#allocation2] sm:$0xff] }
  0xd4   :  { %v109_v14 = vadd.f32 %v130_v12, %v100_v13 }
  0xd6   :  { %v133_v15 = vpack.c.bf16 %v109_v14, %v109_v14 }
  0xd7   :  { %v101_v16 = vld [vmem:[#allocation2 + $0x8] sm:$0xff] }
  0xd8   :  { %120 = vst.msk [vmem:[%s198_s3] sm:$0xf] %vm119_vm3, %v133_v15  ;;  %v110_v17 = vadd.f32 %v130_v12, %v101_v16 }
  0xda   :  { %v134_v18 = vpack.c.bf16 %v110_v17, %v110_v17 }
  0xdc   :  { %121 = vst.msk [vmem:[%s198_s3 + $0x4] sm:$0xf] %vm119_vm3, %v134_v18 }

// kernel: transformer_fwd.36
= control target key start
LH: loop header
LB: loop body
LE: loop exit
PB: predicated region body
PF: predicated region fallthrough
CT: control target
= control target key end

     0   :  { %vm19_vm0 = vcmask 261120   ;;  %v150_v0 = vmov 0.0   ;;  %vm151_vm1 = vmmov 0   ;;  %vm118_vm2 = vcmask 257024   ;;  %s195_s1 = inlined_call_operand.vmem [shape: bf16[32,32], index: 1, kind: input, shape index: {}]   ;;  %s196_s0 = inlined_call_operand.vmem [shape: bf16[16,32], index: 0, kind: input, shape index: {}]   ;;  %s197_s2 = inlined_call_operand.vmem [shape: f32[1,32], index: 2, kind: input, shape index: {}]   ;;  %s198_s3 = inlined_call_operand.vmem [shape: bf16[16,32], index: 3, kind: output, shape index: {}]  }
   0x1   :  { %137 = vmatprep.subr.bf16.mxu0 %v150_v0  ;;  %v147_v1 = vld [vmem:[%s195_s1 + $0x8] sm:$0xff]   ;;  %141 = vmatprep.mubr.msk.bf16.mxu0 %vm151_vm1, %v150_v0  ;;  %20 = vst.msk [vmem:[#allocation2] sm:$0xff] %vm19_vm0, %v150_v0  ;;  %21 = vst.msk [vmem:[#allocation2 + $0x8] sm:$0xff] %vm19_vm0, %v150_v0  ;;  %v148_v2 = vld [vmem:[%s195_s1] sm:$0xff]  }
   0x2   :  { %138 = vmatpush3.bf16.msra.mxu0 %v147_v1  ;;  %v149_v3 = vld [vmem:[%s196_s0] sm:$0xff]  }
   0x3   :  { %139 = vmatprep.subr.bf16.mxu0 %v150_v0  ;;  %v129_v12 = vld [vmem:[%s197_s2] ss:$0 sm:$0xff] }
   0x6   :  { %140 = vmatpush3.bf16.msra.mxu0 %v148_v2 }
   0x8   :  { %v22_v4 = vld [vmem:[#allocation2] sm:$0xff]  ;;  %v23_v8 = vld [vmem:[#allocation2 + $0x8] sm:$0xff] }
   0x9   :  { %142 = vmatmul.mubr.msk.bf16.vlgmr.msra.gmra.mxu0 %vm19_vm0, %v149_v3 }
  0xc9   :  { %v85_v5 = vpop.f32.mrf.mxu0 }
  0xca   :  { %v92_v6 = vadd.f32 %v85_v5, %v22_v4 }
  0xcb   :  { %v143_v7 = vpop.f32.mrf.mxu0 }
  0xcc   :  { %94 = vst.msk [vmem:[#allocation2] sm:$0xff] %vm19_vm0, %v92_v6 }
  0xcd   :  { %v88_v9 = vpop.f32.mrf.mxu0 }
  0xce   :  { %v93_v10 = vadd.f32 %v88_v9, %v23_v8 }
  0xcf   :  { %v144_v11 = vpop.f32.mrf.mxu0 }
  0xd0   :  { %95 = vst.msk [vmem:[#allocation2 + $0x8] sm:$0xff] %vm19_vm0, %v93_v10 }
  0xd3   :  { %v99_v13 = vld [vmem:[#allocation2] sm:$0xff] }
  0xd4   :  { %v108_v14 = vadd.f32 %v129_v12, %v99_v13 }
  0xd6   :  { %v132_v15 = vpack.c.bf16 %v108_v14, %v108_v14 }
  0xd7   :  { %v100_v16 = vld [vmem:[#allocation2 + $0x8] sm:$0xff] }
  0xd8   :  { %119 = vst.msk [vmem:[%s198_s3] sm:$0xf] %vm118_vm2, %v132_v15  ;;  %v109_v17 = vadd.f32 %v129_v12, %v100_v16 }
  0xda   :  { %v133_v18 = vpack.c.bf16 %v109_v17, %v109_v17 }
  0xdc   :  { %120 = vst.msk [vmem:[%s198_s3 + $0x4] sm:$0xf] %vm118_vm2, %v133_v18 }

// kernel: transformer_fwd.34
= control target key start
LH: loop header
LB: loop body
LE: loop exit
PB: predicated region body
PF: predicated region fallthrough
CT: control target
= control target key end

     0   :  { %s830_s15 = smov 0   ;;  %s832_s16 = smov 0   ;;  %s915_s0 = inlined_call_operand.vmem [shape: bf16[2,3,4,8,8], index: 0, kind: input, shape index: {}, may-alias: {0,1,2}]   ;;  %s916_s1 = inlined_call_operand.vmem [shape: bf16[2,3,4,8,8], index: 1, kind: input, shape index: {}, may-alias: {0,1,2}]   ;;  %s917_s2 = inlined_call_operand.vmem [shape: bf16[2,3,4,8,8], index: 2, kind: input, shape index: {}, may-alias: {0,1,2}]   ;;  %s918_s3 = inlined_call_operand.vmem [shape: s32[2,1,8], index: 3, kind: input, shape index: {}]   ;;  %s919_s4 = inlined_call_operand.vmem [shape: bf16[2,4,8,8], index: 4, kind: output, shape index: {}]  }
   0x1   :  { %s834_s17 = smov 0   ;;  %s836_s18 = smov 0  }
   0x2   :  { %s838_s19 = smov 0  }
   0x3 LB: > { %s29_s20 = sadd.s32 1, %s791_s17  ;;  %s33_s21 = sadd.s32 1, %s795_s18  ;;  %s799_s19 = sphi %s838_s19, %s14_s19   ;;  %s795_s18 = sphi %s836_s18, %s923_s18   ;;  %s791_s17 = sphi %s834_s17, %s922_s17   ;;  %s787_s16 = sphi %s832_s16, %s921_s16   ;;  %s783_s15 = sphi %s830_s15, %s920_s15  }
   0x4   : > { %p31_p0 = scmp.ge.s32.totalorder %s29_s20, 4  ;;  %p680_p1 = scmp.ge.s32.totalorder %s799_s19, 1 }
   0x5   : > { %p243_p2 = scmp.lt.s32.totalorder %s799_s19, 9 }
   0x6   : > { %s925_s20 = smov (%p31_p0, %s29_s20), 0  ;;  %s927_s21 = smov (!%p31_p0, %s33_s21), %s795_s18 }
   0x7   : > { %p244_p3 = pnand %p680_p1, %p243_p2  ;;  %p35_p4 = scmp.ge.s32.totalorder %s927_s21, 2 }
   0x8   : > { %p305_p5 = scmp.lt.s32.totalorder (!%p244_p3), %s787_s16, 1  ;;  %p307_p6 = scmp.lt.s32.totalorder (!%p244_p3), %s783_s15, 3 }
   0x9   : > { %s929_s21 = smov (%p35_p4, %s927_s21), 0  ;;  %247 = sbr.rel (%p244_p3) target bundleno = 800 (0x320), region = 36 }
   0xe   : > { %vm359_vm0 = vcmask 64512   ;;  %v801_v0 = vmov 0.0   ;;  %vm802_vm1 = vmmov 0   ;;  %s931_s16 = smov (!%p305_p5, %s787_s16), 1  ;;  %s933_s15 = smov (!%p307_p6, %s783_s15), 3  ;;  %v803_v4 = vmov 0  }
   0xf   : > { %696 = vmatprep.subr.bf16.mxu0 %v801_v0  ;;  %360 = vst.msk [vmem:[#allocation4] sm:$0xff] %vm359_vm0, %v801_v0  ;;  %698 = vmatprep.mubr.msk.bf16.mxu0 %vm802_vm1, %v801_v0  ;;  %s708_s22 = smul.u32 12, %s931_s16  ;;  %vm356_vm2 = vcmask 7168   ;;  %v804_v5 = vmov -inf   ;;  %s342_s7 = scalar_lea.vmem %s918_s3, %s931_s16  ;;  %v413_v6 = vlaneseq  ;;  %vm465_vm7 = vcmask 1043456  }
  0x10   : > { %702 = vmatprep.subr.bf16.mxu1 %v801_v0  ;;  %704 = vmatprep.mubr.msk.bf16.mxu1 %vm802_vm1, %v801_v0  ;;  %357 = vst.msk [vmem:[#allocation2] sm:$0xff] %vm356_vm2, %v804_v5  ;;  %358 = vst.msk [vmem:[#allocation3] sm:$0xff] %vm356_vm2, %v801_v0  ;;  %v410_v7 = vld [vmem:[%s342_s7] sm:$0x1]  ;;  %s684_s11 = sshll.u32 %s931_s16, 2  ;;  %vm525_vm8 = vcmask 60416  }
  0x11   : > { %s310_s23 = sadd.s32 %s708_s22, %s933_s15  ;;  %753 = vset.pattern.permute.xlu0 %v803_v4  ;;  %754 = vset.pattern.permute.xlu1 %v803_v4  ;;  %v414_v8 = vshrl.u32 %v413_v6, 7  ;;  %vm411_vm3 = vcmp.ne.s32.totalorder %v410_v7, 0  ;;  %v421_v12 = vand.u32 127, %v413_v6  ;;  %s348_s12 = sadd.s32 %s684_s11, %s933_s15 }
  0x12   : > { %s867_s24 = sshll.u32 %s310_s23, 2  ;;  %v412_v10 = vsel %vm411_vm3, 1, %v803_v4  ;;  %s685_s13 = sshll.u32 %s348_s12, 2 }
  0x13   : > { %s602_s27 = scalar_lea.vmem %s916_s1, %s867_s24  ;;  %s312_s30 = scalar_lea.vmem %s915_s0, %s867_s24  ;;  %v415_v9 = vsub.s32 0, %v414_v8  ;;  %vm425_vm5 = vcmp.le.s32.totalorder %v421_v12, %v414_v8 }
  0x14   : > { %v686_v1 = vld [vmem:[%s602_s27 + $0x10] sm:$0xf]  ;;  %v361_v3 = vld [vmem:[%s312_s30] sm:$0xf]  ;;  %s608_s10 = scalar_lea.vmem %s917_s2, %s867_s24  ;;  %s350_s23 = scalar_lea.vmem %s919_s4, %s685_s13 }
  0x15   : > { %v368_v2 = vsel %vm359_vm0, %v686_v1, 0  ;;  %v416_v11 = vrot.slane %v412_v10, %v415_v9  ;;  %v688_v24 = vld [vmem:[%s608_s10 + $0x20] sm:$0xf] }
  0x16   : > { %697 = vmatpush3.bf16.xpose.msra.mxu0 %v368_v2  ;;  %v467_v25 = vsel %vm465_vm7, %v688_v24, 0  ;;  %v453_v40 = vld [vmem:[#allocation4] sm:$0xff] }
  0x17   : > { %vm417_vm4 = vcmp.eq.s32.totalorder %v416_v11, 1  ;;  %v429_v20 = vld [vmem:[#allocation2] sm:$0xff]  ;;  %703 = vmatpush3.bf16.msra.mxu1 %v467_v25  ;;  %v445_v34 = vld [vmem:[#allocation3] sm:$0xff] }
  0x18   : > { %vm426_vm6 = vmand %vm417_vm4, %vm425_vm5 }
  0x1d   : > { %699 = vmatmul.mubr.msk.bf16.vlgmr.msra.gmra.mxu0 %vm359_vm0, %v361_v3 }
  0xdd   : > { %v404_v13 = vpop.f32.mrf.mxu0 }
  0xde   : > { %v427_v14 = vsel %vm426_vm6, %v404_v13, -1e+20 }
  0xdf   : > { %v428_v15 = vmul.f32 0.17677669, %v427_v14  ;;  %v700_v16 = vpop.f32.mrf.mxu0 }
  0xe1   : > { %v407_v17 = vpop.f32.mrf.mxu0  ;;  %v430_v18 = vsel %vm359_vm0, %v428_v15, -inf }
  0xe2   : > { %431 = vmax.xlane.f32.xlu0 %v430_v18 }
  0xe3   : > { %v701_v19 = vpop.f32.mrf.mxu0 }
 0x16b   : > { %v432_v21 = vpop.xlane.xlu0 %431 }
 0x16c   : > { %v433_v22 = vmax.f32 %v429_v20, %v432_v21 }
 0x16e   : > { %v434_v23 = vsub.f32 %v429_v20, %v433_v22  ;;  %511 = vst.msk [vmem:[#allocation2] sm:$0xff] %vm356_vm2, %v433_v22  ;;  %439 = vperm.xlu0 %753, %v433_v22  }
 0x170   : > { %v435_v30 = vmul.f32 1.442695, %v434_v23 }
 0x1e9   : > { %v440_v26 = vpop.permute.xlu0 %439 }
 0x1ea   : > { %v442_v27 = vsub.f32 %v428_v15, %v440_v26 }
 0x1ec   : > { %v443_v28 = vmul.f32 1.442695, %v442_v27 }
 0x1ee   : > { %755 = vpow2.f32 %v443_v28 }
 0x1ef   : > { %757 = vpow2.f32 %v435_v30 }
 0x1fb   : > { %v756_v29 = vpop.eup %755 }
 0x1fc   : > { %v447_v31 = vsel %vm359_vm0, %v756_v29, 0.0  ;;  %v460_v32 = vpack.c.bf16 %v756_v29, %v756_v29  ;;  %v758_v33 = vpop.eup %757 }
 0x1fd   : > { %448 = vadd.xlane.f32.xlu1 %v447_v31  ;;  %v446_v35 = vmul.f32 %v758_v33, %v445_v34 }
 0x1fe   : > { %705 = vmatmul.mubr.msk.bf16.vlgmr.msra.gmra.mxu1 %vm359_vm0, %v460_v32 }
 0x20e   : > { %456 = vperm.xlu1 %754, %v758_v33  }
 0x286   : > { %v449_v36 = vpop.xlane.xlu1 %448 }
 0x287   : > { %v450_v37 = vadd.f32 %v449_v36, %v446_v35 }
 0x289   : > { %452 = vst.msk [vmem:[#allocation3] sm:$0xff] %vm356_vm2, %v450_v37 }
 0x28a   : > { %v457_v41 = vpop.permute.xlu1 %456 }
 0x28b   : > { %v459_v42 = vmul.f32 %v457_v41, %v453_v40 }
 0x290   : > { %v516_v38 = vld [vmem:[#allocation3] sm:$0xff] }
 0x291   : > { %759 = vrcp.f32 %v516_v38 }
 0x29e   : > { %v760_v39 = vpop.eup %759 }
 0x29f   : > { %520 = vperm.xlu1 %754, %v760_v39  }
 0x2be   : > { %v503_v43 = vpop.f32.mrf.mxu1 }
 0x2bf   : > { %v509_v44 = vadd.f32 %v503_v43, %v459_v42 }
 0x2c0   : > { %v706_v45 = vpop.f32.mrf.mxu1 }
 0x2c1   : > { %510 = vst.msk [vmem:[#allocation4] sm:$0xff] %vm359_vm0, %v509_v44 }
 0x2c2   : > { %v506_v46 = vpop.f32.mrf.mxu1 }
 0x2c4   : > { %v707_v47 = vpop.f32.mrf.mxu1 }
 0x2c8   : > { %v515_v48 = vld [vmem:[#allocation4] sm:$0xff] }
 0x31a   : > { %v521_v49 = vpop.permute.xlu1 %520 }
 0x31b   : > { %v523_v50 = vmul.f32 %v521_v49, %v515_v48 }
 0x31d   : > { %v524_v51 = vpack.c.bf16 %v523_v50, %v523_v50 }
 0x31f   : > { %526 = vst.msk [vmem:[%s350_s23] sm:$0xf] %vm525_vm8, %v524_v51 }
 0x320 PF: > { %s14_s19 = sadd.s32 1, %s799_s19   ;;  %s920_s15 = smov %s791_s17 }
 0x321   : > { %p11_p7 = scmp.ge.s32.totalorder %s14_s19, 10   ;;  %s921_s16 = smov %s795_s18 }
 0x322   : > { %s922_s17 = smov %s925_s20  ;;  %s923_s18 = smov %s929_s21 }
 0x323   :  { %13 = sbr.rel (!%p11_p7) target bundleno = 3 (0x3), region = 83 }

// kernel: transformer_fwd.37
= control target key start
LH: loop header
LB: loop body
LE: loop exit
PB: predicated region body
PF: predicated region fallthrough
CT: control target
= control target key end

     0   :  { %vm19_vm0 = vcmask 523264   ;;  %v151_v0 = vmov 0.0   ;;  %vm152_vm1 = vmmov 0   ;;  %vm47_vm2 = vcmask 261120   ;;  %s195_s1 = inlined_call_operand.vmem [shape: bf16[32,64], index: 1, kind: input, shape index: {}]   ;;  %s196_s0 = inlined_call_operand.vmem [shape: bf16[16,32], index: 0, kind: input, shape index: {}]   ;;  %s197_s2 = inlined_call_operand.vmem [shape: f32[1,64], index: 2, kind: input, shape index: {}]   ;;  %s198_s3 = inlined_call_operand.vmem [shape: bf16[16,64], index: 3, kind: output, shape index: {}]  }
   0x1   :  { %138 = vmatprep.subr.bf16.mxu0 %v151_v0  ;;  %v148_v1 = vld [vmem:[%s195_s1 + $0x8] sm:$0xff]   ;;  %142 = vmatprep.mubr.msk.bf16.mxu0 %vm152_vm1, %v151_v0  ;;  %20 = vst.msk [vmem:[#allocation2] sm:$0xff] %vm19_vm0, %v151_v0  ;;  %21 = vst.msk [vmem:[#allocation2 + $0x8] sm:$0xff] %vm19_vm0, %v151_v0  ;;  %v149_v2 = vld [vmem:[%s195_s1] sm:$0xff]   ;;  %vm119_vm3 = vcmask 519168  }
   0x2   :  { %139 = vmatpush3.bf16.msra.mxu0 %v148_v1  ;;  %v150_v3 = vld [vmem:[%s196_s0] sm:$0xff]  }
   0x3   :  { %140 = vmatprep.subr.bf16.mxu0 %v151_v0  ;;  %v130_v12 = vld [vmem:[%s197_s2] ss:$0 sm:$0xff] }
   0x6   :  { %141 = vmatpush3.bf16.msra.mxu0 %v149_v2 }
   0x8   :  { %v22_v4 = vld [vmem:[#allocation2] sm:$0xff]  ;;  %v23_v8 = vld [vmem:[#allocation2 + $0x8] sm:$0xff] }
   0x9   :  { %143 = vmatmul.mubr.msk.bf16.vlgmr.msra.gmra.mxu0 %vm47_vm2, %v150_v3 }
  0xc9   :  { %v85_v5 = vpop.f32.mrf.mxu0 }
  0xca   :  { %v92_v6 = vadd.f32 %v85_v5, %v22_v4 }
  0xcb   :  { %v144_v7 = vpop.f32.mrf.mxu0 }
  0xcc   :  { %95 = vst.msk [vmem:[#allocation2] sm:$0xff] %vm19_vm0, %v92_v6 }
  0xcd   :  { %v88_v9 = vpop.f32.mrf.mxu0 }
  0xce   :  { %v93_v10 = vadd.f32 %v88_v9, %v23_v8 }
  0xcf   :  { %v145_v11 = vpop.f32.mrf.mxu0 }
  0xd0   :  { %96 = vst.msk [vmem:[#allocation2 + $0x8] sm:$0xff] %vm19_vm0, %v93_v10 }
  0xd3   :  { %v100_v13 = vld [vmem:[#allocation2] sm:$0xff] }
  0xd4   :  { %v109_v14 = vadd.f32 %v130_v12, %v100_v13 }
  0xd6   :  { %v133_v15 = vpack.c.bf16 %v109_v14, %v109_v14 }
  0xd7   :  { %v101_v16 = vld [vmem:[#allocation2 + $0x8] sm:$0xff] }
  0xd8   :  { %120 = vst.msk [vmem:[%s198_s3] sm:$0xf] %vm119_vm3, %v133_v15  ;;  %v110_v17 = vadd.f32 %v130_v12, %v101_v16 }
  0xda   :  { %v134_v18 = vpack.c.bf16 %v110_v17, %v110_v17 }
  0xdc   :  { %121 = vst.msk [vmem:[%s198_s3 + $0x4] sm:$0xf] %vm119_vm3, %v134_v18 }

// kernel: transformer_fwd.26
= control target key start
LH: loop header
LB: loop body
LE: loop exit
PB: predicated region body
PF: predicated region fallthrough
CT: control target
= control target key end

     0   :  { %s821_s15 = smov 0   ;;  %s823_s16 = smov 0   ;;  %s906_s0 = inlined_call_operand.vmem [shape: bf16[2,3,4,8,8], index: 0, kind: input, shape index: {}, may-alias: {0,1,2}]   ;;  %s907_s1 = inlined_call_operand.vmem [shape: bf16[2,3,4,8,8], index: 1, kind: input, shape index: {}, may-alias: {0,1,2}]   ;;  %s908_s2 = inlined_call_operand.vmem [shape: bf16[2,3,4,8,8], index: 2, kind: input, shape index: {}, may-alias: {0,1,2}]   ;;  %s909_s3 = inlined_call_operand.vmem [shape: s32[2,1,8], index: 3, kind: input, shape index: {}]   ;;  %s910_s4 = inlined_call_operand.vmem [shape: bf16[2,4,8,8], index: 4, kind: output, shape index: {}]  }
   0x1   :  { %s825_s17 = smov 0   ;;  %s827_s18 = smov 0  }
   0x2   :  { %s829_s19 = smov 0  }
   0x3 LB: > { %s29_s20 = sadd.s32 1, %s782_s17  ;;  %s33_s21 = sadd.s32 1, %s786_s18  ;;  %s790_s19 = sphi %s829_s19, %s14_s19   ;;  %s786_s18 = sphi %s827_s18, %s914_s18   ;;  %s782_s17 = sphi %s825_s17, %s913_s17   ;;  %s778_s16 = sphi %s823_s16, %s912_s16   ;;  %s774_s15 = sphi %s821_s15, %s911_s15  }
   0x4   : > { %p31_p0 = scmp.ge.s32.totalorder %s29_s20, 4  ;;  %p671_p1 = scmp.ge.s32.totalorder %s790_s19, 1 }
   0x5   : > { %p243_p2 = scmp.lt.s32.totalorder %s790_s19, 9 }
   0x6   : > { %s916_s20 = smov (%p31_p0, %s29_s20), 0  ;;  %s918_s21 = smov (!%p31_p0, %s33_s21), %s786_s18 }
   0x7   : > { %p244_p3 = pnand %p671_p1, %p243_p2  ;;  %p35_p4 = scmp.ge.s32.totalorder %s918_s21, 2 }
   0x8   : > { %p305_p5 = scmp.lt.s32.totalorder (!%p244_p3), %s778_s16, 1  ;;  %p307_p6 = scmp.lt.s32.totalorder (!%p244_p3), %s774_s15, 3 }
   0x9   : > { %s920_s21 = smov (%p35_p4, %s918_s21), 0  ;;  %247 = sbr.rel (%p244_p3) target bundleno = 800 (0x320), region = 36 }
   0xe   : > { %vm359_vm0 = vcmask 64512   ;;  %v792_v0 = vmov 0.0   ;;  %vm793_vm1 = vmmov 0   ;;  %s922_s16 = smov (!%p305_p5, %s778_s16), 1  ;;  %s924_s15 = smov (!%p307_p6, %s774_s15), 3  ;;  %v794_v4 = vmov 0  }
   0xf   : > { %687 = vmatprep.subr.bf16.mxu0 %v792_v0  ;;  %360 = vst.msk [vmem:[#allocation4] sm:$0xff] %vm359_vm0, %v792_v0  ;;  %689 = vmatprep.mubr.msk.bf16.mxu0 %vm793_vm1, %v792_v0  ;;  %s699_s22 = smul.u32 12, %s922_s16  ;;  %vm356_vm2 = vcmask 7168   ;;  %v795_v5 = vmov -inf   ;;  %s342_s7 = scalar_lea.vmem %s909_s3, %s922_s16  ;;  %v413_v6 = vlaneseq  ;;  %vm456_vm5 = vcmask 1043456  }
  0x10   : > { %693 = vmatprep.subr.bf16.mxu1 %v792_v0  ;;  %695 = vmatprep.mubr.msk.bf16.mxu1 %vm793_vm1, %v792_v0  ;;  %357 = vst.msk [vmem:[#allocation2] sm:$0xff] %vm356_vm2, %v795_v5  ;;  %358 = vst.msk [vmem:[#allocation3] sm:$0xff] %vm356_vm2, %v792_v0  ;;  %v410_v7 = vld [vmem:[%s342_s7] sm:$0x1]  ;;  %s675_s11 = sshll.u32 %s922_s16, 2  ;;  %vm516_vm6 = vcmask 60416  }
  0x11   : > { %s310_s23 = sadd.s32 %s699_s22, %s924_s15  ;;  %744 = vset.pattern.permute.xlu0 %v794_v4  ;;  %745 = vset.pattern.permute.xlu1 %v794_v4  ;;  %v414_v8 = vshrl.u32 %v413_v6, 7  ;;  %vm411_vm3 = vcmp.ne.s32.totalorder %v410_v7, 0  ;;  %s348_s12 = sadd.s32 %s675_s11, %s924_s15 }
  0x12   : > { %s858_s24 = sshll.u32 %s310_s23, 2  ;;  %v412_v10 = vsel %vm411_vm3, 1, %v794_v4  ;;  %s676_s13 = sshll.u32 %s348_s12, 2 }
  0x13   : > { %s593_s27 = scalar_lea.vmem %s907_s1, %s858_s24  ;;  %s312_s30 = scalar_lea.vmem %s906_s0, %s858_s24  ;;  %v415_v9 = vsub.s32 0, %v414_v8 }
  0x14   : > { %v677_v1 = vld [vmem:[%s593_s27 + $0x10] sm:$0xf]  ;;  %v361_v3 = vld [vmem:[%s312_s30] sm:$0xf]  ;;  %s599_s10 = scalar_lea.vmem %s908_s2, %s858_s24  ;;  %s350_s23 = scalar_lea.vmem %s910_s4, %s676_s13 }
  0x15   : > { %v368_v2 = vsel %vm359_vm0, %v677_v1, 0  ;;  %v416_v11 = vrot.slane %v412_v10, %v415_v9  ;;  %v679_v23 = vld [vmem:[%s599_s10 + $0x20] sm:$0xf] }
  0x16   : > { %688 = vmatpush3.bf16.xpose.msra.mxu0 %v368_v2  ;;  %v458_v24 = vsel %vm456_vm5, %v679_v23, 0  ;;  %v444_v39 = vld [vmem:[#allocation4] sm:$0xff] }
  0x17   : > { %vm417_vm4 = vcmp.eq.s32.totalorder %v416_v11, 1  ;;  %v420_v19 = vld [vmem:[#allocation2] sm:$0xff]  ;;  %694 = vmatpush3.bf16.msra.mxu1 %v458_v24  ;;  %v436_v33 = vld [vmem:[#allocation3] sm:$0xff] }
  0x1d   : > { %690 = vmatmul.mubr.msk.bf16.vlgmr.msra.gmra.mxu0 %vm359_vm0, %v361_v3 }
  0xdd   : > { %v404_v12 = vpop.f32.mrf.mxu0 }
  0xde   : > { %v418_v13 = vsel %vm417_vm4, %v404_v12, -1e+20 }
  0xdf   : > { %v419_v14 = vmul.f32 0.17677669, %v418_v13  ;;  %v691_v15 = vpop.f32.mrf.mxu0 }
  0xe1   : > { %v407_v16 = vpop.f32.mrf.mxu0  ;;  %v421_v17 = vsel %vm359_vm0, %v419_v14, -inf }
  0xe2   : > { %422 = vmax.xlane.f32.xlu0 %v421_v17 }
  0xe3   : > { %v692_v18 = vpop.f32.mrf.mxu0 }
 0x16b   : > { %v423_v20 = vpop.xlane.xlu0 %422 }
 0x16c   : > { %v424_v21 = vmax.f32 %v420_v19, %v423_v20 }
 0x16e   : > { %v425_v22 = vsub.f32 %v420_v19, %v424_v21  ;;  %502 = vst.msk [vmem:[#allocation2] sm:$0xff] %vm356_vm2, %v424_v21  ;;  %430 = vperm.xlu0 %744, %v424_v21  }
 0x170   : > { %v426_v29 = vmul.f32 1.442695, %v425_v22 }
 0x1e9   : > { %v431_v25 = vpop.permute.xlu0 %430 }
 0x1ea   : > { %v433_v26 = vsub.f32 %v419_v14, %v431_v25 }
 0x1ec   : > { %v434_v27 = vmul.f32 1.442695, %v433_v26 }
 0x1ee   : > { %746 = vpow2.f32 %v434_v27 }
 0x1ef   : > { %748 = vpow2.f32 %v426_v29 }
 0x1fb   : > { %v747_v28 = vpop.eup %746 }
 0x1fc   : > { %v438_v30 = vsel %vm359_vm0, %v747_v28, 0.0  ;;  %v451_v31 = vpack.c.bf16 %v747_v28, %v747_v28  ;;  %v749_v32 = vpop.eup %748 }
 0x1fd   : > { %439 = vadd.xlane.f32.xlu1 %v438_v30  ;;  %v437_v34 = vmul.f32 %v749_v32, %v436_v33 }
 0x1fe   : > { %696 = vmatmul.mubr.msk.bf16.vlgmr.msra.gmra.mxu1 %vm359_vm0, %v451_v31 }
 0x20e   : > { %447 = vperm.xlu1 %745, %v749_v32  }
 0x286   : > { %v440_v35 = vpop.xlane.xlu1 %439 }
 0x287   : > { %v441_v36 = vadd.f32 %v440_v35, %v437_v34 }
 0x289   : > { %443 = vst.msk [vmem:[#allocation3] sm:$0xff] %vm356_vm2, %v441_v36 }
 0x28a   : > { %v448_v40 = vpop.permute.xlu1 %447 }
 0x28b   : > { %v450_v41 = vmul.f32 %v448_v40, %v444_v39 }
 0x290   : > { %v507_v37 = vld [vmem:[#allocation3] sm:$0xff] }
 0x291   : > { %750 = vrcp.f32 %v507_v37 }
 0x29e   : > { %v751_v38 = vpop.eup %750 }
 0x29f   : > { %511 = vperm.xlu1 %745, %v751_v38  }
 0x2be   : > { %v494_v42 = vpop.f32.mrf.mxu1 }
 0x2bf   : > { %v500_v43 = vadd.f32 %v494_v42, %v450_v41 }
 0x2c0   : > { %v697_v44 = vpop.f32.mrf.mxu1 }
 0x2c1   : > { %501 = vst.msk [vmem:[#allocation4] sm:$0xff] %vm359_vm0, %v500_v43 }
 0x2c2   : > { %v497_v45 = vpop.f32.mrf.mxu1 }
 0x2c4   : > { %v698_v46 = vpop.f32.mrf.mxu1 }
 0x2c8   : > { %v506_v47 = vld [vmem:[#allocation4] sm:$0xff] }
 0x31a   : > { %v512_v48 = vpop.permute.xlu1 %511 }
 0x31b   : > { %v514_v49 = vmul.f32 %v512_v48, %v506_v47 }
 0x31d   : > { %v515_v50 = vpack.c.bf16 %v514_v49, %v514_v49 }
 0x31f   : > { %517 = vst.msk [vmem:[%s350_s23] sm:$0xf] %vm516_vm6, %v515_v50 }
 0x320 PF: > { %s14_s19 = sadd.s32 1, %s790_s19   ;;  %s911_s15 = smov %s782_s17 }
 0x321   : > { %p11_p7 = scmp.ge.s32.totalorder %s14_s19, 10   ;;  %s912_s16 = smov %s786_s18 }
 0x322   : > { %s913_s17 = smov %s916_s20  ;;  %s914_s18 = smov %s920_s21 }
 0x323   :  { %13 = sbr.rel (!%p11_p7) target bundleno = 3 (0x3), region = 83 }

// kernel: transformer_fwd.28
= control target key start
LH: loop header
LB: loop body
LE: loop exit
PB: predicated region body
PF: predicated region fallthrough
CT: control target
= control target key end

     0   :  { %v386_v0 = vmov 0.0   ;;  %vm387_vm0 = vmmov 0   ;;  %vm61_vm1 = vcmask 261120   ;;  %vm298_vm2 = vcmask 257024   ;;  %s492_s1 = inlined_call_operand.vmem [shape: bf16[32,128], index: 1, kind: input, shape index: {}]   ;;  %s493_s3 = inlined_call_operand.vmem [shape: bf16[128,32], index: 3, kind: input, shape index: {}]   ;;  %s494_s0 = inlined_call_operand.vmem [shape: bf16[16,32], index: 0, kind: input, shape index: {}, may-alias: {0,5}]   ;;  %s495_s2 = inlined_call_operand.vmem [shape: f32[1,128], index: 2, kind: input, shape index: {}]   ;;  %s496_s5 = inlined_call_operand.vmem [shape: bf16[16,32], index: 5, kind: input, shape index: {}, may-alias: {0,5}]   ;;  %s497_s4 = inlined_call_operand.vmem [shape: f32[1,32], index: 4, kind: input, shape index: {}]   ;;  %s498_s6 = inlined_call_operand.vmem [shape: f32[1,32], index: 6, kind: input, shape index: {}]   ;;  %s499_s7 = inlined_call_operand.vmem [shape: f32[1,32], index: 7, kind: input, shape index: {}]   ;;  %s500_s8 = inlined_call_operand.vmem [shape: bf16[16,32], index: 8, kind: output, shape index: {}]  }
   0x1   :  { %341 = vmatprep.subr.bf16.mxu0 %v386_v0  ;;  %v371_v1 = vld [vmem:[%s492_s1 + $0x8] sm:$0xff]   ;;  %345 = vmatprep.mubr.msk.bf16.mxu0 %vm387_vm0, %v386_v0  ;;  %v372_v2 = vld [vmem:[%s492_s1] sm:$0xff]   ;;  %v374_v3 = vld [vmem:[%s493_s3 + $0x38] sm:$0xff]  }
   0x2   :  { %349 = vmatprep.subr.bf16.mxu1 %v386_v0  ;;  %365 = vmatprep.mubr.msk.bf16.mxu1 %vm387_vm0, %v386_v0  ;;  %v373_v4 = vld [vmem:[%s494_s0] sm:$0xff]   ;;  %v375_v5 = vld [vmem:[%s493_s3 + $0x30] sm:$0xff]   ;;  %v376_v6 = vld [vmem:[%s493_s3 + $0x28] sm:$0xff]  }
   0x3   :  { %342 = vmatpush3.bf16.msra.mxu0 %v371_v1  ;;  %350 = vmatpush3.bf16.msra.mxu1 %v374_v3  ;;  %v377_v7 = vld [vmem:[%s493_s3 + $0x20] sm:$0xff]   ;;  %v378_v8 = vld [vmem:[%s493_s3 + $0x18] sm:$0xff]   ;;  %v379_v9 = vld [vmem:[%s493_s3 + $0x10] sm:$0xff]  }
   0x4   :  { %343 = vmatprep.subr.bf16.mxu0 %v386_v0  ;;  %351 = vmatprep.subr.bf16.mxu1 %v386_v0  ;;  %v380_v10 = vld [vmem:[%s493_s3 + $0x8] sm:$0xff]   ;;  %v381_v11 = vld [vmem:[%s493_s3] sm:$0xff]  }
   0x5   :  { %v309_v13 = vld [vmem:[%s495_s2] ss:$0 sm:$0xff] }
   0x6   :  { %v326_v22 = vld [vmem:[%s496_s5] sm:$0xff]  }
   0x7   :  { %344 = vmatpush3.bf16.msra.mxu0 %v372_v2  ;;  %352 = vmatpush3.bf16.msra.mxu1 %v375_v5  ;;  %v310_v23 = vld [vmem:[%s497_s4] ss:$0 sm:$0xff]  ;;  %v327_v24 = vunpack.c.l.bf16 %v326_v22  ;;  %v328_v29 = vunpack.c.h.bf16 %v326_v22 }
   0x8   :  { %353 = vmatprep.subr.bf16.mxu1 %v386_v0  ;;  %v319_v53 = vld [vmem:[%s498_s6] ss:$0 sm:$0xff] }
   0x9   :  { %v320_v55 = vld [vmem:[%s499_s7] ss:$0 sm:$0xff] }
   0xa   :  { %346 = vmatmul.mubr.msk.bf16.vlgmr.msra.gmra.mxu0 %vm61_vm1, %v373_v4 }
   0xb   :  { %354 = vmatpush3.bf16.msra.mxu1 %v376_v6 }
   0xc   :  { %355 = vmatprep.subr.bf16.mxu1 %v386_v0 }
   0xf   :  { %356 = vmatpush3.bf16.msra.mxu1 %v377_v7 }
  0x10   :  { %357 = vmatprep.subr.bf16.mxu1 %v386_v0 }
  0x13   :  { %358 = vmatpush3.bf16.msra.mxu1 %v378_v8 }
  0x14   :  { %359 = vmatprep.subr.bf16.mxu1 %v386_v0 }
  0x17   :  { %360 = vmatpush3.bf16.msra.mxu1 %v379_v9 }
  0x18   :  { %361 = vmatprep.subr.bf16.mxu1 %v386_v0 }
  0x1b   :  { %362 = vmatpush3.bf16.msra.mxu1 %v380_v10 }
  0x1c   :  { %363 = vmatprep.subr.bf16.mxu1 %v386_v0 }
  0x1f   :  { %364 = vmatpush3.bf16.msra.mxu1 %v381_v11 }
  0xca   :  { %v99_v12 = vpop.f32.mrf.mxu0 }
  0xcb   :  { %v122_v15 = vadd.f32 %v309_v13, %v99_v12 }
  0xcc   :  { %v347_v14 = vpop.f32.mrf.mxu0 }
  0xcd   :  { %v124_v19 = vmax.f32 %v122_v15, 0.0 }
  0xce   :  { %v102_v16 = vpop.f32.mrf.mxu0 }
  0xcf   :  { %v123_v17 = vadd.f32 %v309_v13, %v102_v16 }
  0xd0   :  { %v348_v18 = vpop.f32.mrf.mxu0 }
  0xd1   :  { %v125_v20 = vmax.f32 %v123_v17, 0.0 }
  0xd3   :  { %v126_v21 = vpack.c.bf16 %v125_v20, %v124_v19 }
  0xd5   :  { %366 = vmatmul.mubr.bf16.vlgmr.msra.gmra.mxu1 %v126_v21 }
 0x195   :  { %v232_v25 = vpop.f32.mrf.mxu1 }
 0x196   :  { %v233_v26 = vadd.f32 %v310_v23, %v232_v25 }
 0x197   :  { %v367_v27 = vpop.f32.mrf.mxu1 }
 0x198   :  { %v243_v28 = vadd.f32 %v327_v24, %v233_v26 }
 0x199   :  { %v235_v30 = vpop.f32.mrf.mxu1 }
 0x19a   :  { %v236_v31 = vadd.f32 %v310_v23, %v235_v30  ;;  %v245_v32 = vsel %vm61_vm1, %v243_v28, 0.0 }
 0x19b   :  { %246 = vadd.xlane.f32.xlu0 %v245_v32  ;;  %v368_v33 = vpop.f32.mrf.mxu1 }
 0x19c   :  { %v244_v34 = vadd.f32 %v328_v29, %v236_v31 }
 0x19e   :  { %v248_v35 = vsel %vm61_vm1, %v244_v34, 0.0 }
 0x19f   :  { %249 = vadd.xlane.f32.xlu0 %v248_v35 }
 0x224   :  { %v247_v36 = vpop.xlane.xlu0 %246 }
 0x225   :  { %v252_v37 = vmul.f32 0.03125, %v247_v36 }
 0x227   :  { %v254_v38 = vsub.f32 %v243_v28, %v252_v37 }
 0x228   :  { %v250_v39 = vpop.xlane.xlu0 %249 }
 0x229   :  { %v253_v40 = vmul.f32 0.03125, %v250_v39  ;;  %v256_v41 = vmul.f32 %v254_v38, %v254_v38 }
 0x22b   :  { %v255_v42 = vsub.f32 %v244_v34, %v253_v40  ;;  %v258_v43 = vsel %vm61_vm1, %v256_v41, 0.0 }
 0x22c   :  { %259 = vadd.xlane.f32.xlu1 %v258_v43 }
 0x22d   :  { %v257_v44 = vmul.f32 %v255_v42, %v255_v42 }
 0x22f   :  { %v261_v45 = vsel %vm61_vm1, %v257_v44, 0.0 }
 0x230   :  { %262 = vadd.xlane.f32.xlu1 %v261_v45 }
 0x2b5   :  { %v260_v46 = vpop.xlane.xlu1 %259 }
 0x2b6   :  { %v264_v47 = vmul.f32 0.03125, %v260_v46 }
 0x2b8   :  { %v266_v48 = vadd.f32 1e-05, %v264_v47 }
 0x2b9   :  { %v263_v49 = vpop.xlane.xlu1 %262 }
 0x2ba   :  { %382 = vrsqrt.f32 %v266_v48  ;;  %v265_v50 = vmul.f32 0.03125, %v263_v49 }
 0x2bc   :  { %v267_v51 = vadd.f32 1e-05, %v265_v50 }
 0x2be   :  { %384 = vrsqrt.f32 %v267_v51 }
 0x2c7   :  { %v383_v52 = vpop.eup %382 }
 0x2c8   :  { %v270_v54 = vmul.f32 %v383_v52, %v254_v38 }
 0x2ca   :  { %v279_v56 = vmul.f32 %v319_v53, %v270_v54 }
 0x2cb   :  { %v385_v57 = vpop.eup %384 }
 0x2cc   :  { %v288_v58 = vadd.f32 %v320_v55, %v279_v56  ;;  %v271_v59 = vmul.f32 %v385_v57, %v255_v42 }
 0x2ce   :  { %v323_v60 = vpack.c.bf16 %v288_v58, %v288_v58  ;;  %v280_v61 = vmul.f32 %v319_v53, %v271_v59 }
 0x2d0   :  { %299 = vst.msk [vmem:[%s500_s8] sm:$0xf] %vm298_vm2, %v323_v60  ;;  %v289_v62 = vadd.f32 %v320_v55, %v280_v61 }
 0x2d2   :  { %v324_v63 = vpack.c.bf16 %v289_v62, %v289_v62 }
 0x2d4   :  { %300 = vst.msk [vmem:[%s500_s8 + $0x4] sm:$0xf] %vm298_vm2, %v324_v63 }

// kernel: transformer_fwd.38
= control target key start
LH: loop header
LB: loop body
LE: loop exit
PB: predicated region body
PF: predicated region fallthrough
CT: control target
= control target key end

     0   :  { %s816_s15 = smov 0   ;;  %s818_s16 = smov 0   ;;  %s901_s0 = inlined_call_operand.vmem [shape: bf16[2,1,4,8,8], index: 0, kind: input, shape index: {}]   ;;  %s902_s1 = inlined_call_operand.vmem [shape: bf16[2,2,4,8,8], index: 1, kind: input, shape index: {}, may-alias: {1,2}]   ;;  %s903_s2 = inlined_call_operand.vmem [shape: bf16[2,2,4,8,8], index: 2, kind: input, shape index: {}, may-alias: {1,2}]   ;;  %s904_s3 = inlined_call_operand.vmem [shape: s32[2,1,8], index: 3, kind: input, shape index: {}]   ;;  %s905_s4 = inlined_call_operand.vmem [shape: bf16[2,4,8,8], index: 4, kind: output, shape index: {}]  }
   0x1   :  { %s820_s17 = smov 0   ;;  %s822_s18 = smov 0  }
   0x2   :  { %s824_s19 = smov 0  }
   0x3 LB: > { %s29_s20 = sadd.s32 1, %s777_s17  ;;  %s33_s21 = sadd.s32 1, %s781_s18  ;;  %s785_s19 = sphi %s824_s19, %s14_s19   ;;  %s781_s18 = sphi %s822_s18, %s909_s18   ;;  %s777_s17 = sphi %s820_s17, %s908_s17   ;;  %s773_s16 = sphi %s818_s16, %s907_s16   ;;  %s769_s15 = sphi %s816_s15, %s906_s15  }
   0x4   : > { %p31_p0 = scmp.ge.s32.totalorder %s29_s20, 4  ;;  %p665_p1 = scmp.ge.s32.totalorder %s785_s19, 1 }
   0x5   : > { %p242_p2 = scmp.lt.s32.totalorder %s785_s19, 9 }
   0x6   : > { %s911_s20 = smov (%p31_p0, %s29_s20), 0  ;;  %s913_s21 = smov (!%p31_p0, %s33_s21), %s781_s18 }
   0x7   : > { %p243_p3 = pnand %p665_p1, %p242_p2  ;;  %p35_p4 = scmp.ge.s32.totalorder %s913_s21, 2 }
   0x8   : > { %p303_p5 = scmp.lt.s32.totalorder (!%p243_p3), %s773_s16, 1  ;;  %p305_p6 = scmp.lt.s32.totalorder (!%p243_p3), %s769_s15, 3 }
   0x9   : > { %s915_s21 = smov (%p35_p4, %s913_s21), 0  ;;  %246 = sbr.rel (%p243_p3) target bundleno = 799 (0x31f), region = 36 }
   0xe   : > { %vm356_vm0 = vcmask 64512   ;;  %v787_v0 = vmov 0.0   ;;  %vm788_vm1 = vmmov 0   ;;  %s917_s16 = smov (!%p303_p5, %s773_s16), 1  ;;  %s919_s15 = smov (!%p305_p6, %s769_s15), 3  ;;  %v789_v5 = vmov 0  }
   0xf   : > { %683 = vmatprep.subr.bf16.mxu0 %v787_v0  ;;  %357 = vst.msk [vmem:[#allocation4] sm:$0xff] %vm356_vm0, %v787_v0  ;;  %685 = vmatprep.mubr.msk.bf16.mxu0 %vm788_vm1, %v787_v0  ;;  %s668_s22 = sshll.u32 %s917_s16, 3  ;;  %s666_s23 = sshll.u32 %s917_s16, 2  ;;  %vm353_vm3 = vcmask 7168   ;;  %v790_v7 = vmov -inf   ;;  %v410_v8 = vlaneseq  ;;  %vm453_vm5 = vcmask 1043456  }
  0x10   : > { %689 = vmatprep.subr.bf16.mxu1 %v787_v0  ;;  %691 = vmatprep.mubr.msk.bf16.mxu1 %vm788_vm1, %v787_v0  ;;  %s847_s24 = sadd.s32 %s668_s22, %s919_s15  ;;  %s849_s25 = sadd.s32 %s666_s23, %s919_s15  ;;  %354 = vst.msk [vmem:[#allocation2] sm:$0xff] %vm353_vm3, %v790_v7  ;;  %355 = vst.msk [vmem:[#allocation3] sm:$0xff] %vm353_vm3, %v787_v0  ;;  %vm513_vm6 = vcmask 60416  }
  0x11   : > { %s669_s26 = sshll.u32 %s847_s24, 2  ;;  %s667_s30 = sshll.u32 %s849_s25, 2  ;;  %739 = vset.pattern.permute.xlu0 %v789_v5  ;;  %740 = vset.pattern.permute.xlu1 %v789_v5  ;;  %v411_v9 = vshrl.u32 %v410_v8, 7 }
  0x12   : > { %s321_s29 = scalar_lea.vmem %s902_s1, %s669_s26  ;;  %s310_s7 = scalar_lea.vmem %s901_s0, %s667_s30 }
  0x13   : > { %v359_v1 = vld [vmem:[%s321_s29] sm:$0xf]  ;;  %s339_s10 = scalar_lea.vmem %s904_s3, %s917_s16  ;;  %v412_v10 = vsub.s32 0, %v411_v9  ;;  %s593_s13 = scalar_lea.vmem %s903_s2, %s669_s26 }
  0x14   : > { %v365_v2 = vsel %vm356_vm0, %v359_v1, 0  ;;  %v358_v3 = vld [vmem:[%s310_s7] sm:$0xf]  ;;  %v675_v23 = vld [vmem:[%s593_s13 + $0x10] sm:$0xf]  ;;  %s347_s16 = scalar_lea.vmem %s905_s4, %s667_s30 }
  0x15   : > { %684 = vmatpush3.bf16.xpose.msra.mxu0 %v365_v2  ;;  %v407_v4 = vld [vmem:[%s339_s10] sm:$0x1]  ;;  %v455_v24 = vsel %vm453_vm5, %v675_v23, 0 }
  0x16   : > { %vm408_vm2 = vcmp.ne.s32.totalorder %v407_v4, 0  ;;  %690 = vmatpush3.bf16.msra.mxu1 %v455_v24  ;;  %v441_v39 = vld [vmem:[#allocation4] sm:$0xff] }
  0x17   : > { %v409_v6 = vsel %vm408_vm2, 1, %v789_v5  ;;  %v417_v19 = vld [vmem:[#allocation2] sm:$0xff]  ;;  %v433_v33 = vld [vmem:[#allocation3] sm:$0xff] }
  0x18   : > { %v413_v11 = vrot.slane %v409_v6, %v412_v10 }
  0x1a   : > { %vm414_vm4 = vcmp.eq.s32.totalorder %v413_v11, 1 }
  0x1c   : > { %686 = vmatmul.mubr.msk.bf16.vlgmr.msra.gmra.mxu0 %vm356_vm0, %v358_v3 }
  0xdc   : > { %v401_v12 = vpop.f32.mrf.mxu0 }
  0xdd   : > { %v415_v13 = vsel %vm414_vm4, %v401_v12, -1e+20 }
  0xde   : > { %v416_v14 = vmul.f32 0.17677669, %v415_v13  ;;  %v687_v15 = vpop.f32.mrf.mxu0 }
  0xe0   : > { %v404_v16 = vpop.f32.mrf.mxu0  ;;  %v418_v17 = vsel %vm356_vm0, %v416_v14, -inf }
  0xe1   : > { %419 = vmax.xlane.f32.xlu0 %v418_v17 }
  0xe2   : > { %v688_v18 = vpop.f32.mrf.mxu0 }
 0x16a   : > { %v420_v20 = vpop.xlane.xlu0 %419 }
 0x16b   : > { %v421_v21 = vmax.f32 %v417_v19, %v420_v20 }
 0x16d   : > { %v422_v22 = vsub.f32 %v417_v19, %v421_v21  ;;  %499 = vst.msk [vmem:[#allocation2] sm:$0xff] %vm353_vm3, %v421_v21  ;;  %427 = vperm.xlu0 %739, %v421_v21  }
 0x16f   : > { %v423_v29 = vmul.f32 1.442695, %v422_v22 }
 0x1e8   : > { %v428_v25 = vpop.permute.xlu0 %427 }
 0x1e9   : > { %v430_v26 = vsub.f32 %v416_v14, %v428_v25 }
 0x1eb   : > { %v431_v27 = vmul.f32 1.442695, %v430_v26 }
 0x1ed   : > { %741 = vpow2.f32 %v431_v27 }
 0x1ee   : > { %743 = vpow2.f32 %v423_v29 }
 0x1fa   : > { %v742_v28 = vpop.eup %741 }
 0x1fb   : > { %v435_v30 = vsel %vm356_vm0, %v742_v28, 0.0  ;;  %v448_v31 = vpack.c.bf16 %v742_v28, %v742_v28  ;;  %v744_v32 = vpop.eup %743 }
 0x1fc   : > { %436 = vadd.xlane.f32.xlu1 %v435_v30  ;;  %v434_v34 = vmul.f32 %v744_v32, %v433_v33 }
 0x1fd   : > { %692 = vmatmul.mubr.msk.bf16.vlgmr.msra.gmra.mxu1 %vm356_vm0, %v448_v31 }
 0x20d   : > { %444 = vperm.xlu1 %740, %v744_v32  }
 0x285   : > { %v437_v35 = vpop.xlane.xlu1 %436 }
 0x286   : > { %v438_v36 = vadd.f32 %v437_v35, %v434_v34 }
 0x288   : > { %440 = vst.msk [vmem:[#allocation3] sm:$0xff] %vm353_vm3, %v438_v36 }
 0x289   : > { %v445_v40 = vpop.permute.xlu1 %444 }
 0x28a   : > { %v447_v41 = vmul.f32 %v445_v40, %v441_v39 }
 0x28f   : > { %v504_v37 = vld [vmem:[#allocation3] sm:$0xff] }
 0x290   : > { %745 = vrcp.f32 %v504_v37 }
 0x29d   : > { %v746_v38 = vpop.eup %745 }
 0x29e   : > { %508 = vperm.xlu1 %740, %v746_v38  }
 0x2bd   : > { %v491_v42 = vpop.f32.mrf.mxu1 }
 0x2be   : > { %v497_v43 = vadd.f32 %v491_v42, %v447_v41 }
 0x2bf   : > { %v693_v44 = vpop.f32.mrf.mxu1 }
 0x2c0   : > { %498 = vst.msk [vmem:[#allocation4] sm:$0xff] %vm356_vm0, %v497_v43 }
 0x2c1   : > { %v494_v45 = vpop.f32.mrf.mxu1 }
 0x2c3   : > { %v694_v46 = vpop.f32.mrf.mxu1 }
 0x2c7   : > { %v503_v47 = vld [vmem:[#allocation4] sm:$0xff] }
 0x319   : > { %v509_v48 = vpop.permute.xlu1 %508 }
 0x31a   : > { %v511_v49 = vmul.f32 %v509_v48, %v503_v47 }
 0x31c   : > { %v512_v50 = vpack.c.bf16 %v511_v49, %v511_v49 }
 0x31e   : > { %514 = vst.msk [vmem:[%s347_s16] sm:$0xf] %vm513_vm6, %v512_v50 }
 0x31f PF: > { %s14_s19 = sadd.s32 1, %s785_s19   ;;  %s906_s15 = smov %s777_s17 }
 0x320   : > { %p11_p7 = scmp.ge.s32.totalorder %s14_s19, 10   ;;  %s907_s16 = smov %s781_s18 }
 0x321   : > { %s908_s17 = smov %s911_s20  ;;  %s909_s18 = smov %s915_s21 }
 0x322   :  { %13 = sbr.rel (!%p11_p7) target bundleno = 3 (0x3), region = 83 }

// kernel: transformer_fwd.49
= control target key start
LH: loop header
LB: loop body
LE: loop exit
PB: predicated region body
PF: predicated region fallthrough
CT: control target
= control target key end

     0   :  { %v174_v1 = vmov 0.0   ;;  %vm175_vm0 = vmmov 0   ;;  %s214_s0 = inlined_call_operand.vmem [shape: bf16[16,32], index: 0, kind: input, shape index: {}]   ;;  %s215_s1 = inlined_call_operand.vmem [shape: bf16[32,128], index: 1, kind: input, shape index: {}]   ;;  %s216_s2 = inlined_call_operand.vmem [shape: f32[1,128], index: 2, kind: input, shape index: {}]   ;;  %s217_s3 = inlined_call_operand.hbm [shape: f32[16,128], index: 3, kind: output, shape index: {}]  }
   0x1   :  { %v149_v0 = vld [vmem:[%s215_s1 + $0x8] sm:$0xff]   ;;  %136 = vmatprep.subr.bf16.mxu0 %v174_v1  ;;  %v150_v2 = vld [vmem:[%s215_s1] sm:$0xff]   ;;  %140 = vmatprep.mubr.msk.bf16.mxu0 %vm175_vm0, %v174_v1 }
   0x2   :  { %137 = vmatpush3.bf16.msra.mxu0 %v149_v0 }
   0x3   :  { %138 = vmatprep.subr.bf16.mxu0 %v174_v1 }
   0x4   :  { %8 = vsyncpa [#allocation4], 0  ;;  %v151_v3 = vld [vmem:[%s214_s0] sm:$0xff]   ;;  %vm47_vm1 = vcmask 261120   ;;  %s176_s20 = smov [#allocation3]  }
   0x5   :  { %v132_v4 = vld [vmem:[%s216_s2] ss:$0 sm:$0xff]  ;;  %s117_s21 = sshll.u32 %s176_s20, 4  ;;  %s118_s21 = int_to_ptr.vmem [resolvable:$true] %s117_s21 }
   0x6   :  { %139 = vmatpush3.bf16.msra.mxu0 %v150_v2  ;;  %s152_s1 = scalar_lea.vmem %s118_s21, 256  ;;  %p157_p1 = scmp.lt.s32.totalorder %s118_s21, %s118_s21 }
   0x7   :  { %p153_p0 = scmp.ne.s32.totalorder %s118_s21, %s152_s1  ;;  %p158_p2 = scmp.lt.s32.totalorder %s152_s1, %s152_s1 }
   0x9   :  { %141 = vmatmul.mubr.msk.bf16.vlgmr.msra.gmra.mxu0 %vm47_vm1, %v151_v3  ;;  %p159_p3 = por %p158_p2, %p157_p1 }
   0xb   :  { %p160_p4 = pnand %p159_p3, %p153_p0 }
  0xc9   :  { %v85_v5 = vpop.f32.mrf.mxu0 }
  0xca   :  { %v108_v6 = vadd.f32 %v132_v4, %v85_v5 }
  0xcb   :  { %v142_v7 = vpop.f32.mrf.mxu0 }
  0xcc   :  { %110 = vst [vmem:[#allocation3] sm:$0xff] %v108_v6 }
  0xcd   :  { %v88_v8 = vpop.f32.mrf.mxu0 }
  0xce   :  { %v109_v9 = vadd.f32 %v132_v4, %v88_v8 }
  0xcf   :  { %v143_v10 = vpop.f32.mrf.mxu0 }
  0xd0   :  { %111 = vst [vmem:[#allocation3 + $0x8] sm:$0xff] %v109_v9 }
  0xd1   :  { %163 = shalt.err (!%p160_p4)
}
  0xd2   :  { %s177_s0 = smov 128   ;;  %s178_s2 = smov 8  }
  0xd3   :  { %123 = dma.vmem_to_hbm [thread:$0]  %s118_s21, 256, %s217_s3, [#allocation4], %s177_s0, %s177_s0, %s178_s2  }
  0xd4   :  { %172 = dma.done.wait [#allocation4], 256  }
  0xd5   :  { %173 = vsyncadd [#allocation4], 4294967040 }
  0xd6   :  { %127 = vsyncpa [#allocation4], 1 }

</bundles_post_ra>
